<compile_context>
chip_gen: v6e
topology: v6e:2x2x1
jax: 0.10.0
libtpu: 0.0.40
codegen_flags: <defaults>
</compile_context>

<pallas_src>
import functools

import jax
import jax.numpy as jnp
from jax import lax
from jax.experimental import pallas as pl
from jax.experimental.pallas import tpu as pltpu

_HALO = 8  # halo-fetch granularity along H (rows); bounds dilation to <= 4


# ----------------------------- fused kernel ----------------------------------


def _fused_dwsep_kernel(x_main_ref, x_halo_ref, w_dw_ref, b_dw_ref,
                        w_pw_ref, b_pw_ref, o_ref, *,
                        stride, dilation, h_tile, w_out, h_in_main,
                        cin, mult, c_starts):
    """DW3x3(+BN+ReLU) -> PW1x1(+BN+ReLU) for one (batch, H-tile) block.

    Channel-last layout (C on lanes):
      x_main_ref : (1, h_in_main, Wp, Cin)   main input rows of this tile
      x_halo_ref : (1, 8, Wp, Cin)           next 8 rows (bottom halo)
      w_dw_ref   : VMEM (mult*9, Cin)        BN-scale-folded depthwise taps
      b_dw_ref   : VMEM (mult, Cin)          folded depthwise BN bias
      w_pw_ref   : VMEM (Cin*mult, Cout)     BN-scale-folded pointwise weights
      b_pw_ref   : VMEM (1, Cout)            folded pointwise BN bias
      o_ref      : (1, h_tile*w_out, Cout)   flattened lane-dense output tile
    """
    s, d = stride, dilation
    hw = h_tile * w_out

    def load_tap(kh, kw):
        r0 = kh * d
        c0 = c_starts[kw]
        span = h_tile if s == 1 else s * h_tile          # rows to pull
        n_main = min(span, h_in_main - r0)
        parts = []
        if n_main > 0:
            parts.append(x_main_ref[0, r0:r0 + n_main, c0:c0 + w_out, :])
        n_halo = span - n_main
        if n_halo > 0:
            parts.append(x_halo_ref[0, 0:n_halo, c0:c0 + w_out, :])
        win = parts[0] if len(parts) == 1 else jnp.concatenate(parts, axis=0)
        if s == 1:
            return win                                    # (h_tile, w_out, Cin)
        win = win.reshape(h_tile, s, w_out, cin)          # split leading dim
        return win[:, 0, :, :]                            # every s-th row

    # --- depthwise 3x3 + folded BN + ReLU (lane-wise VPU FMAs) --------------
    acc = [None] * mult
    for kh in range(3):
        for kw in range(3):
            tap = load_tap(kh, kw)                        # (h_tile, w_out, Cin)
            for m in range(mult):
                idx = m * 9 + kh * 3 + kw
                term = tap * w_dw_ref[idx:idx + 1, :]     # (1, Cin) broadcast
                acc[m] = term if acc[m] is None else acc[m] + term
    y_per_m = [jnp.maximum(acc[m] + b_dw_ref[m:m + 1, :], 0.0)
               for m in range(mult)]

    # --- pointwise 1x1 + folded BN + ReLU (MXU matmul) ----------------------
    b_pw = b_pw_ref[0:1, :]                               # (1, Cout)
    if w_out % 8 == 0 or h_tile == 1:
        pw = None
        for m in range(mult):
            part = jnp.dot(y_per_m[m].reshape(hw, cin),
                           w_pw_ref[m * cin:(m + 1) * cin, :],
                           preferred_element_type=jnp.float32)
            pw = part if pw is None else pw + part
        o_ref[0, :, :] = jnp.maximum(pw + b_pw, 0.0).astype(o_ref.dtype)
    else:
        # ragged output widths: per-row matmuls keep relayouts trivial
        for h in range(h_tile):
            row = None
            for m in range(mult):
                part = jnp.dot(y_per_m[m][h],
                               w_pw_ref[m * cin:(m + 1) * cin, :],
                               preferred_element_type=jnp.float32)
                row = part if row is None else row + part
            o_ref[0, h * w_out:(h + 1) * w_out, :] = jnp.maximum(
                row + b_pw, 0.0).astype(o_ref.dtype)


# ----------------------------- wrapper helpers --------------------------------


def _fold_bn(gamma, beta, mean, var, eps):
    scale = gamma / jnp.sqrt(var + eps)
    return scale, beta - mean * scale


def _vmem_bytes_estimate(h_tile, s, Wp, cin, cout, mult, w_out):
    h_in_main = h_tile * s
    hw = h_tile * w_out
    blocks = 2 * (h_in_main * Wp * cin + _HALO * Wp * cin + hw * cout)  # 2x buf
    work = hw * cin * (3 + mult) + 2 * hw * cout
    if s > 1:
        work += h_in_main * w_out * cin
    return 4 * (blocks + work) + (2 << 20)


def _pick_h_tile(h_out, s, Wp, cin, cout, mult, w_out, vmem_budget):
    divisors = [c for c in (256, 128, 64, 32, 16, 8)
                if c <= h_out and h_out % c == 0]
    for cand in divisors:
        if _vmem_bytes_estimate(cand, s, Wp, cin, cout, mult, w_out) <= vmem_budget:
            return cand
    if divisors:
        return divisors[-1]
    return h_out                    # single (possibly ragged) tile


# ----------------------------- wrapper ----------------------------------------


def dwconv_bn_relu(x_nchw, p, *, stride=1, dilation=1, eps=1e-5):
    """Forward pass of _DWConvBNReLU (inference / eval BN). NCHW in, NCHW out."""
    N, Cin, H, W = x_nchw.shape
    Cdw = p["dw_weight"].shape[0]
    Cout = p["pw_weight"].shape[0]
    assert Cdw % Cin == 0
    mult = Cdw // Cin
    s, d = int(stride), int(dilation)
    # TODO(synk): generalize to stride > 2 and dilation > 4 (needs a larger
    # configurable halo block and a generalized column de-interleave).
    assert s in (1, 2), "stride must be 1 or 2"
    assert 1 <= d <= 4, "dilation must be in [1, 4]"
    pad = d                                  # _ConvBNReLU(..., padding=dilation)

    h_out = (H - 1) // s + 1
    w_out = (W - 1) // s + 1
    Wp = W + 2 * pad

    # ---- generation-aware tiling (v5e/v6e: 128 MiB VMEM, v7x: 64 MiB) ------
    try:
        vmem_cap = int(getattr(pltpu.get_tpu_info(), "vmem_capacity_bytes",
                               64 << 20))
    except Exception:
        vmem_cap = 64 << 20
    budget = max(24 << 20, vmem_cap - (16 << 20))
    h_tile = _pick_h_tile(h_out, s, Wp, Cin, Cout, mult, w_out, budget)
    n_h_tiles = h_out // h_tile

    h_in_main = h_tile * s
    if n_h_tiles == 1:
        h_in_main = -(-h_in_main // _HALO) * _HALO       # round up to 8
    h_in_blocks = h_in_main // _HALO
    Hp_ext = n_h_tiles * h_in_main + _HALO               # padded/extended height

    # ---- host-side prep: NHWC + zero pad + BN folding (layout plumbing) ----
    x = jnp.transpose(x_nchw.astype(jnp.float32), (0, 2, 3, 1))       # NHWC
    x = jnp.pad(x, ((0, 0), (pad, Hp_ext - H - pad), (pad, pad), (0, 0)))
    if s == 2:
        # even/odd column de-interleave: every tap becomes a contiguous slice
        x = jnp.concatenate([x[:, :, 0::2, :], x[:, :, 1::2, :]], axis=2)
        wpe = (Wp + 1) // 2
        c_starts = tuple((kw * d) // 2 if (kw * d) % 2 == 0
                         else wpe + (kw * d) // 2 for kw in range(3))
    else:
        c_starts = tuple(kw * d for kw in range(3))

    dw_scale, dw_bias = _fold_bn(p["dw_gamma"], p["dw_beta"],
                                 p["dw_mean"], p["dw_var"], eps)
    pw_scale, pw_bias = _fold_bn(p["pw_gamma"], p["pw_beta"],
                                 p["pw_mean"], p["pw_var"], eps)

    # depthwise taps, BN scale folded, channels re-grouped as (multiplier, Cin)
    w_dw = (p["dw_weight"][:, 0] * dw_scale[:, None, None]).astype(jnp.float32)
    w_dw = w_dw.reshape(Cin, mult, 3, 3).transpose(1, 2, 3, 0).reshape(mult * 9, Cin)
    b_dw = dw_bias.astype(jnp.float32).reshape(Cin, mult).T              # (mult, Cin)
    # pointwise weights, BN scale folded, rows permuted to the same (m, g) order
    w_pw = (p["pw_weight"][:, :, 0, 0] * pw_scale[:, None]).astype(jnp.float32)
    w_pw = w_pw.reshape(Cout, Cin, mult).transpose(2, 1, 0).reshape(Cdw, Cout)
    b_pw = pw_bias.astype(jnp.float32).reshape(1, Cout)

    kernel = functools.partial(
        _fused_dwsep_kernel, stride=s, dilation=d, h_tile=h_tile, w_out=w_out,
        h_in_main=h_in_main, cin=Cin, mult=mult, c_starts=c_starts)

    est = _vmem_bytes_estimate(h_tile, s, Wp, Cin, Cout, mult, w_out)
    vmem_limit = int(max(16 << 20,
                         min(max(32 << 20, 2 * est), vmem_cap - (8 << 20))))

    out = pl.pallas_call(
        kernel,
        out_shape=jax.ShapeDtypeStruct((N, h_out * w_out, Cout), jnp.float32),
        grid=(N, n_h_tiles),
        in_specs=[
            # main input rows of this tile (NHWC, full width, full channels)
            pl.BlockSpec((1, h_in_main, Wp, Cin), lambda n, t: (n, t, 0, 0)),
            # bottom halo: the next 8 rows of the same array
            pl.BlockSpec((1, _HALO, Wp, Cin),
                         lambda n, t: (n, (t + 1) * h_in_blocks, 0, 0)),
            # small folded weights / biases: whole-array VMEM residents
            pl.BlockSpec((mult * 9, Cin), lambda n, t: (0, 0)),
            pl.BlockSpec((mult, Cin), lambda n, t: (0, 0)),
            pl.BlockSpec((Cdw, Cout), lambda n, t: (0, 0)),
            pl.BlockSpec((1, Cout), lambda n, t: (0, 0)),
        ],
        out_specs=pl.BlockSpec((1, h_tile * w_out, Cout),
                               lambda n, t: (n, t, 0)),
        compiler_params=pltpu.CompilerParams(
            dimension_semantics=("parallel", "parallel"),
            vmem_limit_bytes=vmem_limit),
    )(x, x, w_dw, b_dw, w_pw, b_pw)

    # back to NCHW
    return out.reshape(N, h_out, w_out, Cout).transpose(0, 3, 1, 2)


# ----------------------------- reference (plain JAX) --------------------------


def reference(x_nchw, p, *, stride=1, dilation=1, eps=1e-5):
    dn = ("NCHW", "OIHW", "NCHW")
    pad = dilation
    y = lax.conv_general_dilated(
        x_nchw, p["dw_weight"], window_strides=(stride, stride),
        padding=[(pad, pad), (pad, pad)], rhs_dilation=(dilation, dilation),
        dimension_numbers=dn, feature_group_count=x_nchw.shape[1],
        precision=lax.Precision.HIGHEST)
    sc, b = _fold_bn(p["dw_gamma"], p["dw_beta"], p["dw_mean"], p["dw_var"], eps)
    y = jnp.maximum(y * sc[None, :, None, None] + b[None, :, None, None], 0.0)
    y = lax.conv_general_dilated(
        y, p["pw_weight"], window_strides=(1, 1), padding="VALID",
        dimension_numbers=dn, precision=lax.Precision.HIGHEST)
    sc, b = _fold_bn(p["pw_gamma"], p["pw_beta"], p["pw_mean"], p["pw_var"], eps)
    return jnp.maximum(y * sc[None, :, None, None] + b[None, :, None, None], 0.0)


# ----------------------------- main -------------------------------------------


if __name__ == "__main__":
    def make_params(key, cdw, cout):
        ks = jax.random.split(key, 10)
        return {
            # depthwise conv (PyTorch weight shape: (Cdw, Cin/groups=1, 3, 3))
            "dw_weight": 0.2 * jax.random.normal(ks[0], (cdw, 1, 3, 3), jnp.float32),
            "dw_gamma": 1.0 + 0.1 * jax.random.normal(ks[1], (cdw,), jnp.float32),
            "dw_beta": 0.1 * jax.random.normal(ks[2], (cdw,), jnp.float32),
            "dw_mean": 0.1 * jax.random.normal(ks[3], (cdw,), jnp.float32),
            "dw_var": 0.5 + jnp.abs(jax.random.normal(ks[4], (cdw,), jnp.float32)),
            # pointwise conv (PyTorch weight shape: (Cout, Cdw, 1, 1))
            "pw_weight": 0.2 * jax.random.normal(ks[5], (cout, cdw, 1, 1), jnp.float32),
            "pw_gamma": 1.0 + 0.1 * jax.random.normal(ks[6], (cout,), jnp.float32),
            "pw_beta": 0.1 * jax.random.normal(ks[7], (cout,), jnp.float32),
            "pw_mean": 0.1 * jax.random.normal(ks[8], (cout,), jnp.float32),
            "pw_var": 0.5 + jnp.abs(jax.random.normal(ks[9], (cout,), jnp.float32)),
        }

    key = jax.random.PRNGKey(0)
    ks = jax.random.split(key, 8)

    N = 2
    cases = [
        # _DWConvBNReLU(in=4, dw=4, out=8, stride=1)
        dict(Cin=4, Cdw=4, Cout=8, stride=1, dilation=1, H=16, W=16),
        # dilation=2, H=24 -> exercises multi-tile grid + halo stitching
        dict(Cin=4, Cdw=4, Cout=8, stride=1, dilation=2, H=24, W=16),
        # depthwise channel multiplier 2
        dict(Cin=4, Cdw=8, Cout=8, stride=1, dilation=1, H=16, W=16),
        # stride-2 downsampling layer
        dict(Cin=4, Cdw=4, Cout=8, stride=2, dilation=1, H=16, W=16),
    ]

    for i, cfg in enumerate(cases):
        params = make_params(ks[2 * i], cfg["Cdw"], cfg["Cout"])
        x = jax.random.normal(ks[2 * i + 1],
                              (N, cfg["Cin"], cfg["H"], cfg["W"]), jnp.float32)

        out = jax.block_until_ready(
            dwconv_bn_relu(x, params, stride=cfg["stride"],
                           dilation=cfg["dilation"]))
        ref = jax.block_until_ready(
            reference(x, params, stride=cfg["stride"], dilation=cfg["dilation"]))

        assert out.shape == ref.shape, (i, out.shape, ref.shape)
        err = float(jnp.max(jnp.abs(out - ref)))
        assert jnp.allclose(out, ref, rtol=5e-3, atol=5e-3), (i, err)

    print("KERNEL_OK")
</pallas_src>

<mosaic_0001>
module attributes {stable_mosaic.version = 11 : i64} {
  func.func @_fused_dwsep_kernel(%arg0: i32, %arg1: i32, %arg2: memref<1x16x18x4xf32, #tpu.memory_space<vmem>>, %arg3: memref<1x8x18x4xf32, #tpu.memory_space<vmem>>, %arg4: memref<9x4xf32, #tpu.memory_space<vmem>>, %arg5: memref<1x4xf32, #tpu.memory_space<vmem>>, %arg6: memref<4x8xf32, #tpu.memory_space<vmem>>, %arg7: memref<1x8xf32, #tpu.memory_space<vmem>>, %arg8: memref<1x256x8xf32, #tpu.memory_space<vmem>>) attributes {dimension_semantics = [#tpu.dimension_semantics<parallel>, #tpu.dimension_semantics<parallel>], iteration_bounds = array<i64: 2, 1>, scalar_prefetch = 0 : i64, scratch_operands = 0 : i64, tpu.core_type = #tpu.core_type<tc>, window_params = [{transform_indices = @transform_0, window_bounds = array<i64: 1, 16, 18, 4>}, {transform_indices = @transform_1, window_bounds = array<i64: 1, 8, 18, 4>}, {pipeline_mode = #tpu.pipeline_mode<synchronous>, transform_indices = @transform_2, window_bounds = array<i64: 9, 4>}, {pipeline_mode = #tpu.pipeline_mode<synchronous>, transform_indices = @transform_3, window_bounds = array<i64: 1, 4>}, {pipeline_mode = #tpu.pipeline_mode<synchronous>, transform_indices = @transform_4, window_bounds = array<i64: 4, 8>}, {pipeline_mode = #tpu.pipeline_mode<synchronous>, transform_indices = @transform_5, window_bounds = array<i64: 1, 8>}, {transform_indices = @transform_6, window_bounds = array<i64: 1, 256, 8>}]} {
    %c0 = arith.constant 0 : index
    %c0_0 = arith.constant 0 : index
    %c0_1 = arith.constant 0 : index
    %c0_2 = arith.constant 0 : index
    %0 = vector.load %arg2[%c0, %c0_0, %c0_1, %c0_2] : memref<1x16x18x4xf32, #tpu.memory_space<vmem>>, vector<1x16x16x4xf32>
    %1 = vector.shape_cast %0 : vector<1x16x16x4xf32> to vector<16x16x4xf32>
    %c0_3 = arith.constant 0 : index
    %c0_4 = arith.constant 0 : index
    %2 = vector.load %arg4[%c0_3, %c0_4] : memref<9x4xf32, #tpu.memory_space<vmem>>, vector<1x4xf32>
    %3 = vector.shape_cast %2 : vector<1x4xf32> to vector<1x1x4xf32>
    %4 = vector.broadcast %3 : vector<1x1x4xf32> to vector<16x16x4xf32>
    %5 = arith.mulf %1, %4 : vector<16x16x4xf32>
    %c0_5 = arith.constant 0 : index
    %c0_6 = arith.constant 0 : index
    %c1 = arith.constant 1 : index
    %c0_7 = arith.constant 0 : index
    %6 = vector.load %arg2[%c0_5, %c0_6, %c1, %c0_7] : memref<1x16x18x4xf32, #tpu.memory_space<vmem>>, vector<1x16x16x4xf32>
    %7 = vector.shape_cast %6 : vector<1x16x16x4xf32> to vector<16x16x4xf32>
    %c1_8 = arith.constant 1 : index
    %c0_9 = arith.constant 0 : index
    %8 = vector.load %arg4[%c1_8, %c0_9] : memref<9x4xf32, #tpu.memory_space<vmem>>, vector<1x4xf32>
    %9 = vector.shape_cast %8 : vector<1x4xf32> to vector<1x1x4xf32>
    %10 = vector.broadcast %9 : vector<1x1x4xf32> to vector<16x16x4xf32>
    %11 = arith.mulf %7, %10 : vector<16x16x4xf32>
    %12 = arith.addf %5, %11 : vector<16x16x4xf32>
    %c0_10 = arith.constant 0 : index
    %c0_11 = arith.constant 0 : index
    %c2 = arith.constant 2 : index
    %c0_12 = arith.constant 0 : index
    %13 = vector.load %arg2[%c0_10, %c0_11, %c2, %c0_12] : memref<1x16x18x4xf32, #tpu.memory_space<vmem>>, vector<1x16x16x4xf32>
    %14 = vector.shape_cast %13 : vector<1x16x16x4xf32> to vector<16x16x4xf32>
    %c2_13 = arith.constant 2 : index
    %c0_14 = arith.constant 0 : index
    %15 = vector.load %arg4[%c2_13, %c0_14] : memref<9x4xf32, #tpu.memory_space<vmem>>, vector<1x4xf32>
    %16 = vector.shape_cast %15 : vector<1x4xf32> to vector<1x1x4xf32>
    %17 = vector.broadcast %16 : vector<1x1x4xf32> to vector<16x16x4xf32>
    %18 = arith.mulf %14, %17 : vector<16x16x4xf32>
    %19 = arith.addf %12, %18 : vector<16x16x4xf32>
    %c0_15 = arith.constant 0 : index
    %c1_16 = arith.constant 1 : index
    %c0_17 = arith.constant 0 : index
    %c0_18 = arith.constant 0 : index
    %20 = vector.load %arg2[%c0_15, %c1_16, %c0_17, %c0_18] : memref<1x16x18x4xf32, #tpu.memory_space<vmem>>, vector<1x15x16x4xf32>
    %21 = vector.shape_cast %20 : vector<1x15x16x4xf32> to vector<15x16x4xf32>
    %c0_19 = arith.constant 0 : index
    %c0_20 = arith.constant 0 : index
    %c0_21 = arith.constant 0 : index
    %c0_22 = arith.constant 0 : index
    %22 = vector.load %arg3[%c0_19, %c0_20, %c0_21, %c0_22] : memref<1x8x18x4xf32, #tpu.memory_space<vmem>>, vector<1x1x16x4xf32>
    %23 = vector.shape_cast %22 : vector<1x1x16x4xf32> to vector<1x16x4xf32>
    %24 = tpu.concatenate %21, %23 in 0 : vector<15x16x4xf32>, vector<1x16x4xf32> -> vector<16x16x4xf32>
    %c3 = arith.constant 3 : index
    %c0_23 = arith.constant 0 : index
    %25 = vector.load %arg4[%c3, %c0_23] : memref<9x4xf32, #tpu.memory_space<vmem>>, vector<1x4xf32>
    %26 = vector.shape_cast %25 : vector<1x4xf32> to vector<1x1x4xf32>
    %27 = vector.broadcast %26 : vector<1x1x4xf32> to vector<16x16x4xf32>
    %28 = arith.mulf %24, %27 : vector<16x16x4xf32>
    %29 = arith.addf %19, %28 : vector<16x16x4xf32>
    %c0_24 = arith.constant 0 : index
    %c1_25 = arith.constant 1 : index
    %c1_26 = arith.constant 1 : index
    %c0_27 = arith.constant 0 : index
    %30 = vector.load %arg2[%c0_24, %c1_25, %c1_26, %c0_27] : memref<1x16x18x4xf32, #tpu.memory_space<vmem>>, vector<1x15x16x4xf32>
    %31 = vector.shape_cast %30 : vector<1x15x16x4xf32> to vector<15x16x4xf32>
    %c0_28 = arith.constant 0 : index
    %c0_29 = arith.constant 0 : index
    %c1_30 = arith.constant 1 : index
    %c0_31 = arith.constant 0 : index
    %32 = vector.load %arg3[%c0_28, %c0_29, %c1_30, %c0_31] : memref<1x8x18x4xf32, #tpu.memory_space<vmem>>, vector<1x1x16x4xf32>
    %33 = vector.shape_cast %32 : vector<1x1x16x4xf32> to vector<1x16x4xf32>
    %34 = tpu.concatenate %31, %33 in 0 : vector<15x16x4xf32>, vector<1x16x4xf32> -> vector<16x16x4xf32>
    %c4 = arith.constant 4 : index
    %c0_32 = arith.constant 0 : index
    %35 = vector.load %arg4[%c4, %c0_32] : memref<9x4xf32, #tpu.memory_space<vmem>>, vector<1x4xf32>
    %36 = vector.shape_cast %35 : vector<1x4xf32> to vector<1x1x4xf32>
    %37 = vector.broadcast %36 : vector<1x1x4xf32> to vector<16x16x4xf32>
    %38 = arith.mulf %34, %37 : vector<16x16x4xf32>
    %39 = arith.addf %29, %38 : vector<16x16x4xf32>
    %c0_33 = arith.constant 0 : index
    %c1_34 = arith.constant 1 : index
    %c2_35 = arith.constant 2 : index
    %c0_36 = arith.constant 0 : index
    %40 = vector.load %arg2[%c0_33, %c1_34, %c2_35, %c0_36] : memref<1x16x18x4xf32, #tpu.memory_space<vmem>>, vector<1x15x16x4xf32>
    %41 = vector.shape_cast %40 : vector<1x15x16x4xf32> to vector<15x16x4xf32>
    %c0_37 = arith.constant 0 : index
    %c0_38 = arith.constant 0 : index
    %c2_39 = arith.constant 2 : index
    %c0_40 = arith.constant 0 : index
    %42 = vector.load %arg3[%c0_37, %c0_38, %c2_39, %c0_40] : memref<1x8x18x4xf32, #tpu.memory_space<vmem>>, vector<1x1x16x4xf32>
    %43 = vector.shape_cast %42 : vector<1x1x16x4xf32> to vector<1x16x4xf32>
    %44 = tpu.concatenate %41, %43 in 0 : vector<15x16x4xf32>, vector<1x16x4xf32> -> vector<16x16x4xf32>
    %c5 = arith.constant 5 : index
    %c0_41 = arith.constant 0 : index
    %45 = vector.load %arg4[%c5, %c0_41] : memref<9x4xf32, #tpu.memory_space<vmem>>, vector<1x4xf32>
    %46 = vector.shape_cast %45 : vector<1x4xf32> to vector<1x1x4xf32>
    %47 = vector.broadcast %46 : vector<1x1x4xf32> to vector<16x16x4xf32>
    %48 = arith.mulf %44, %47 : vector<16x16x4xf32>
    %49 = arith.addf %39, %48 : vector<16x16x4xf32>
    %c0_42 = arith.constant 0 : index
    %c2_43 = arith.constant 2 : index
    %c0_44 = arith.constant 0 : index
    %c0_45 = arith.constant 0 : index
    %50 = vector.load %arg2[%c0_42, %c2_43, %c0_44, %c0_45] : memref<1x16x18x4xf32, #tpu.memory_space<vmem>>, vector<1x14x16x4xf32>
    %51 = vector.shape_cast %50 : vector<1x14x16x4xf32> to vector<14x16x4xf32>
    %c0_46 = arith.constant 0 : index
    %c0_47 = arith.constant 0 : index
    %c0_48 = arith.constant 0 : index
    %c0_49 = arith.constant 0 : index
    %52 = vector.load %arg3[%c0_46, %c0_47, %c0_48, %c0_49] : memref<1x8x18x4xf32, #tpu.memory_space<vmem>>, vector<1x2x16x4xf32>
    %53 = vector.shape_cast %52 : vector<1x2x16x4xf32> to vector<2x16x4xf32>
    %54 = tpu.concatenate %51, %53 in 0 : vector<14x16x4xf32>, vector<2x16x4xf32> -> vector<16x16x4xf32>
    %c6 = arith.constant 6 : index
    %c0_50 = arith.constant 0 : index
    %55 = vector.load %arg4[%c6, %c0_50] : memref<9x4xf32, #tpu.memory_space<vmem>>, vector<1x4xf32>
    %56 = vector.shape_cast %55 : vector<1x4xf32> to vector<1x1x4xf32>
    %57 = vector.broadcast %56 : vector<1x1x4xf32> to vector<16x16x4xf32>
    %58 = arith.mulf %54, %57 : vector<16x16x4xf32>
    %59 = arith.addf %49, %58 : vector<16x16x4xf32>
    %c0_51 = arith.constant 0 : index
    %c2_52 = arith.constant 2 : index
    %c1_53 = arith.constant 1 : index
    %c0_54 = arith.constant 0 : index
    %60 = vector.load %arg2[%c0_51, %c2_52, %c1_53, %c0_54] : memref<1x16x18x4xf32, #tpu.memory_space<vmem>>, vector<1x14x16x4xf32>
    %61 = vector.shape_cast %60 : vector<1x14x16x4xf32> to vector<14x16x4xf32>
    %c0_55 = arith.constant 0 : index
    %c0_56 = arith.constant 0 : index
    %c1_57 = arith.constant 1 : index
    %c0_58 = arith.constant 0 : index
    %62 = vector.load %arg3[%c0_55, %c0_56, %c1_57, %c0_58] : memref<1x8x18x4xf32, #tpu.memory_space<vmem>>, vector<1x2x16x4xf32>
    %63 = vector.shape_cast %62 : vector<1x2x16x4xf32> to vector<2x16x4xf32>
    %64 = tpu.concatenate %61, %63 in 0 : vector<14x16x4xf32>, vector<2x16x4xf32> -> vector<16x16x4xf32>
    %c7 = arith.constant 7 : index
    %c0_59 = arith.constant 0 : index
    %65 = vector.load %arg4[%c7, %c0_59] : memref<9x4xf32, #tpu.memory_space<vmem>>, vector<1x4xf32>
    %66 = vector.shape_cast %65 : vector<1x4xf32> to vector<1x1x4xf32>
    %67 = vector.broadcast %66 : vector<1x1x4xf32> to vector<16x16x4xf32>
    %68 = arith.mulf %64, %67 : vector<16x16x4xf32>
    %69 = arith.addf %59, %68 : vector<16x16x4xf32>
    %c0_60 = arith.constant 0 : index
    %c2_61 = arith.constant 2 : index
    %c2_62 = arith.constant 2 : index
    %c0_63 = arith.constant 0 : index
    %70 = vector.load %arg2[%c0_60, %c2_61, %c2_62, %c0_63] : memref<1x16x18x4xf32, #tpu.memory_space<vmem>>, vector<1x14x16x4xf32>
    %71 = vector.shape_cast %70 : vector<1x14x16x4xf32> to vector<14x16x4xf32>
    %c0_64 = arith.constant 0 : index
    %c0_65 = arith.constant 0 : index
    %c2_66 = arith.constant 2 : index
    %c0_67 = arith.constant 0 : index
    %72 = vector.load %arg3[%c0_64, %c0_65, %c2_66, %c0_67] : memref<1x8x18x4xf32, #tpu.memory_space<vmem>>, vector<1x2x16x4xf32>
    %73 = vector.shape_cast %72 : vector<1x2x16x4xf32> to vector<2x16x4xf32>
    %74 = tpu.concatenate %71, %73 in 0 : vector<14x16x4xf32>, vector<2x16x4xf32> -> vector<16x16x4xf32>
    %c8 = arith.constant 8 : index
    %c0_68 = arith.constant 0 : index
    %75 = vector.load %arg4[%c8, %c0_68] : memref<9x4xf32, #tpu.memory_space<vmem>>, vector<1x4xf32>
    %76 = vector.shape_cast %75 : vector<1x4xf32> to vector<1x1x4xf32>
    %77 = vector.broadcast %76 : vector<1x1x4xf32> to vector<16x16x4xf32>
    %78 = arith.mulf %74, %77 : vector<16x16x4xf32>
    %79 = arith.addf %69, %78 : vector<16x16x4xf32>
    %c0_69 = arith.constant 0 : index
    %c0_70 = arith.constant 0 : index
    %80 = vector.load %arg5[%c0_69, %c0_70] : memref<1x4xf32, #tpu.memory_space<vmem>>, vector<1x4xf32>
    %81 = vector.shape_cast %80 : vector<1x4xf32> to vector<1x1x4xf32>
    %82 = vector.broadcast %81 : vector<1x1x4xf32> to vector<16x16x4xf32>
    %83 = arith.addf %79, %82 : vector<16x16x4xf32>
    %cst = arith.constant 0.000000e+00 : f32
    %84 = vector.broadcast %cst : f32 to vector<16x16x4xf32>
    %85 = arith.maximumf %83, %84 : vector<16x16x4xf32>
    %c0_71 = arith.constant 0 : index
    %c0_72 = arith.constant 0 : index
    %86 = vector.load %arg7[%c0_71, %c0_72] : memref<1x8xf32, #tpu.memory_space<vmem>>, vector<1x8xf32>
    %87 = vector.shape_cast %85 : vector<16x16x4xf32> to vector<256x4xf32>
    %c0_73 = arith.constant 0 : index
    %c0_74 = arith.constant 0 : index
    %88 = vector.load %arg6[%c0_73, %c0_74] : memref<4x8xf32, #tpu.memory_space<vmem>>, vector<4x8xf32>
    %cst_75 = arith.constant dense<0.000000e+00> : vector<256x8xf32>
    %89 = tpu.matmul %87, %88, %cst_75 {dimension_numbers = #tpu.dot_dimension_numbers<[1], [0], [0], [1], [0, 0, 1, 1], [], []>} : vector<256x4xf32>, vector<4x8xf32>, vector<256x8xf32> -> vector<256x8xf32>
    %90 = vector.broadcast %86 : vector<1x8xf32> to vector<256x8xf32>
    %91 = arith.addf %89, %90 : vector<256x8xf32>
    %cst_76 = arith.constant 0.000000e+00 : f32
    %92 = vector.broadcast %cst_76 : f32 to vector<256x8xf32>
    %93 = arith.maximumf %91, %92 : vector<256x8xf32>
    %c0_77 = arith.constant 0 : index
    %c0_78 = arith.constant 0 : index
    %c0_79 = arith.constant 0 : index
    %94 = vector.load %arg8[%c0_77, %c0_78, %c0_79] : memref<1x256x8xf32, #tpu.memory_space<vmem>>, vector<1x256x8xf32>
    %95 = vector.shape_cast %94 : vector<1x256x8xf32> to vector<256x8xf32>
    %96 = vector.shape_cast %93 : vector<256x8xf32> to vector<1x256x8xf32>
    tpu.vector_store %arg8[%c0_77, %c0_78, %c0_79], %96 {strides = array<i32>} : memref<1x256x8xf32, #tpu.memory_space<vmem>>, vector<1x256x8xf32>,
    return
  }
  func.func @transform_0(%arg0: i32, %arg1: i32) -> (i32, i32, i32, i32) {
    %c0_i32 = arith.constant 0 : i32
    %c0_i32_0 = arith.constant 0 : i32
    %c0_i32_1 = arith.constant 0 : i32
    return %arg0, %arg1, %c0_i32, %c0_i32_0 : i32, i32, i32, i32
  }
  func.func @transform_1(%arg0: i32, %arg1: i32) -> (i32, i32, i32, i32) {
    %c1_i32 = arith.constant 1 : i32
    %0 = arith.addi %arg1, %c1_i32 : i32
    %c2_i32 = arith.constant 2 : i32
    %1 = arith.muli %0, %c2_i32 : i32
    %c0_i32 = arith.constant 0 : i32
    %c0_i32_0 = arith.constant 0 : i32
    %c0_i32_1 = arith.constant 0 : i32
    return %arg0, %1, %c0_i32, %c0_i32_0 : i32, i32, i32, i32
  }
  func.func @transform_2(%arg0: i32, %arg1: i32) -> (i32, i32) {
    %c0_i32 = arith.constant 0 : i32
    %c0_i32_0 = arith.constant 0 : i32
    %c0_i32_1 = arith.constant 0 : i32
    return %c0_i32, %c0_i32_0 : i32, i32
  }
  func.func @transform_3(%arg0: i32, %arg1: i32) -> (i32, i32) {
    %c0_i32 = arith.constant 0 : i32
    %c0_i32_0 = arith.constant 0 : i32
    %c0_i32_1 = arith.constant 0 : i32
    return %c0_i32, %c0_i32_0 : i32, i32
  }
  func.func @transform_4(%arg0: i32, %arg1: i32) -> (i32, i32) {
    %c0_i32 = arith.constant 0 : i32
    %c0_i32_0 = arith.constant 0 : i32
    %c0_i32_1 = arith.constant 0 : i32
    return %c0_i32, %c0_i32_0 : i32, i32
  }
  func.func @transform_5(%arg0: i32, %arg1: i32) -> (i32, i32) {
    %c0_i32 = arith.constant 0 : i32
    %c0_i32_0 = arith.constant 0 : i32
    %c0_i32_1 = arith.constant 0 : i32
    return %c0_i32, %c0_i32_0 : i32, i32
  }
  func.func @transform_6(%arg0: i32, %arg1: i32) -> (i32, i32, i32) {
    %c0_i32 = arith.constant 0 : i32
    %c0_i32_0 = arith.constant 0 : i32
    return %arg0, %arg1, %c0_i32 : i32, i32, i32
  }
}

</mosaic_0001>

<bundles_post_ra>
// kernel: tpu_custom_call.1
= control target key start
LH: loop header
LB: loop body
LE: loop exit
PB: predicated region body
PF: predicated region fallthrough
CT: control target
= control target key end

     0   :  { %s2239_s21 = smov 0   ;;  %s2241_s22 = smov 0   ;;  %s3415_s0 = inlined_call_operand.vmem [shape: f32[2,24,18,4], index: 0, kind: input, shape index: {}]   ;;  %s3416_s1 = inlined_call_operand.vmem [shape: f32[2,24,18,4], index: 1, kind: input, shape index: {}]   ;;  %s3417_s2 = inlined_call_operand.vmem [shape: f32[9,4], index: 2, kind: input, shape index: {}]   ;;  %s3418_s3 = inlined_call_operand.vmem [shape: f32[1,4], index: 3, kind: input, shape index: {}]   ;;  %s3419_s4 = inlined_call_operand.vmem [shape: f32[4,8], index: 4, kind: input, shape index: {}]   ;;  %s3420_s5 = inlined_call_operand.vmem [shape: f32[1,8], index: 5, kind: input, shape index: {}]   ;;  %s3421_s6 = inlined_call_operand.vmem [shape: f32[2,256,8], index: 6, kind: output, shape index: {}]  }
   0x1   :  { %s2243_s23 = smov 0  }
   0x2 LB: > { %s28_s24 = sadd.s32 1, %s2198_s22  ;;  %p1830_p0 = scmp.ge.s32.totalorder %s2202_s23, 1  ;;  %s2202_s23 = sphi %s2243_s23, %s16_s23   ;;  %s2198_s22 = sphi %s2241_s22, %s3423_s22   ;;  %s2194_s21 = sphi %s2239_s21, %s3422_s21  }
   0x3   : > { %p30_p1 = scmp.ge.s32.totalorder %s28_s24, 2  ;;  %p270_p2 = scmp.lt.s32.totalorder %s2202_s23, 3 }
   0x5   : > { %s3425_s24 = smov (%p30_p1, %s28_s24), 0  ;;  %p271_p3 = pnand %p1830_p0, %p270_p2 }
   0x6   : > { %p332_p4 = scmp.lt.s32.totalorder (!%p271_p3), %s2194_s21, 1 }
   0x7   : > { %274 = sbr.rel (%p271_p3) target bundleno = 380 (0x17c), region = 44 }
   0xc   : > { %v1317_v0 = vld [vmem:[%s3419_s4] sm:$0xf]  ;;  %vm1421_vm0 = vcmask 1043456   ;;  %s3427_s21 = smov (!%p332_p4, %s2194_s21), 1  ;;  %v2293_v5 = vld [vmem:[%s3417_s2 + $0x4] ss:$0 sm:$0xff] }
   0xd   : > { %2091 = vmatprep.subr.msk.mxu0 %vm1421_vm0, %v1317_v0  ;;  %2141 = vmatprep.subr.msk.mxu1 %vm1421_vm0, %v1317_v0  ;;  %s2143_s27 = smul.u32 576, %s3427_s21  ;;  %v2266_v1 = vld [vmem:[%s3417_s2] ss:$0 sm:$0xff]  ;;  %v2271_v2 = vld [vmem:[%s3417_s2 + $0x1] ss:$0 sm:$0xff]  ;;  %vm1324_vm1 = vcmask 31744  }
   0xe   : > { %2092 = vmatpush3.msk.msra.mxu0 %vm1421_vm0, %v1317_v0  ;;  %2142 = vmatpush3.msk.msra.mxu1 %vm1421_vm0, %v1317_v0  ;;  %v2276_v3 = vld [vmem:[%s3417_s2 + $0x2] ss:$0 sm:$0xff]  ;;  %v2281_v4 = vld [vmem:[%s3417_s2 + $0x3] ss:$0 sm:$0xff]  ;;  %v2298_v6 = vld [vmem:[%s3417_s2 + $0x5] ss:$0 sm:$0xff] }
   0xf   : > { %s2288_s14 = scalar_lea.vmem %s3415_s0, %s2143_s27  ;;  %v2303_v7 = vld [vmem:[%s3417_s2 + $0x6] ss:$0 sm:$0xff]  ;;  %v2315_v15 = vld [vmem:[%s3417_s2 + $0x7] ss:$0 sm:$0xff]  ;;  %v2320_v16 = vld [vmem:[%s3417_s2 + $0x8] ss:$0 sm:$0xff] }
  0x10   : > { %v372_v8 = vld [vmem:[%s2288_s14] sm:$0xff]  ;;  %v1838_v14 = vld [vmem:[%s2288_s14 + $0x18] sm:$0xff]  ;;  %v2328_v20 = vld [vmem:[%s2288_s14 + $0x30] sm:$0xff]  ;;  %s2056_s8 = sadd.s32 384, %s2143_s27  ;;  %s2057_s15 = sshll.u32 %s3427_s21, 8  ;;  %vm1682_vm2 = vcmask 64512  }
  0x11   : > { %v441_v9 = vld [vmem:[%s2288_s14 + $0x1] sm:$0xff]  ;;  %v409_v11 = vmul.f32 %v2266_v1, %v372_v8  ;;  %v681_v17 = vmul.f32 %v2281_v4, %v1838_v14  ;;  %v1869_v18 = vld [vmem:[%s2288_s14 + $0x19] sm:$0xff]  ;;  %v2337_v27 = vmul.f32 %v1838_v14, %v2266_v1  ;;  %v983_v28 = vmul.f32 %v2303_v7, %v2328_v20  ;;  %v2342_v29 = vld [vmem:[%s2288_s14 + $0x31] sm:$0xff]  ;;  %s3125_s10 = scalar_lea.vmem %s3416_s1, %s2056_s8  ;;  %s3309_s18 = scalar_lea.vmem %s3421_s6, %s2057_s15 }
  0x12   : > { %v542_v10 = vld [vmem:[%s2288_s14 + $0x2] sm:$0xff]  ;;  %v478_v12 = vmul.f32 %v2271_v2, %v441_v9  ;;  %v2325_v19 = vld [vmem:[%s2288_s14 + $0x1a] sm:$0xff]  ;;  %v782_v22 = vmul.f32 %v2293_v5, %v1869_v18  ;;  %v2345_v30 = vld [vmem:[%s2288_s14 + $0x32] sm:$0xff]  ;;  %v1082_v36 = vmul.f32 %v2315_v15, %v2342_v29  ;;  %v480_v41 = vmul.f32 %v1869_v18, %v2271_v2 }
  0x13   : > { %v579_v13 = vmul.f32 %v2276_v3, %v542_v10  ;;  %v883_v23 = vmul.f32 %v2298_v6, %v2325_v19  ;;  %v388_v24 = vld [vmem:[%s2288_s14 + $0xc0] sm:$0xff]  ;;  %v2351_v34 = vld [vmem:[%s2288_s14 + $0xd8] sm:$0xff]  ;;  %v2357_v37 = vmul.f32 %v2320_v16, %v2345_v30  ;;  %v2366_v40 = vld [vmem:[%s2288_s14 + $0xf0] sm:$0xff] }
  0x14   : > { %v510_v21 = vadd.f32 %v478_v12, %v409_v11  ;;  %v457_v25 = vld [vmem:[%s2288_s14 + $0xc1] sm:$0xff]  ;;  %v425_v31 = vmul.f32 %v2266_v1, %v388_v24  ;;  %v2360_v38 = vld [vmem:[%s2288_s14 + $0xd9] sm:$0xff]  ;;  %v697_v43 = vmul.f32 %v2281_v4, %v2351_v34  ;;  %v442_v47 = vld [vmem:[%s2288_s14 + $0x9] sm:$0xff]  ;;  %v999_v57 = vmul.f32 %v2303_v7, %v2366_v40 }
  0x15   : > { %v558_v26 = vld [vmem:[%s2288_s14 + $0xc2] sm:$0xff]  ;;  %v494_v32 = vmul.f32 %v2271_v2, %v457_v25  ;;  %v2363_v39 = vld [vmem:[%s2288_s14 + $0xda] sm:$0xff]  ;;  %v798_v44 = vmul.f32 %v2293_v5, %v2360_v38  ;;  %v543_v48 = vld [vmem:[%s2288_s14 + $0xa] sm:$0xff]  ;;  %v479_v53 = vmul.f32 %v2271_v2, %v442_v47 }
  0x16   : > { %v595_v33 = vmul.f32 %v2276_v3, %v558_v26  ;;  %v611_v35 = vadd.f32 %v579_v13, %v510_v21  ;;  %v899_v45 = vmul.f32 %v2298_v6, %v2363_v39  ;;  %v373_v46 = vld [vmem:[%s2288_s14 + $0x8] sm:$0xff]  ;;  %v2379_v50 = vld [vmem:[%s2288_s14 + $0xf1] sm:$0xff]  ;;  %v580_v54 = vmul.f32 %v2276_v3, %v543_v48  ;;  %v2388_v55 = vld [vmem:[%s2288_s14 + $0x20] sm:$0xff] }
  0x17   : > { %v526_v42 = vadd.f32 %v494_v32, %v425_v31  ;;  %v2382_v51 = vld [vmem:[%s2288_s14 + $0xf2] sm:$0xff]  ;;  %v410_v52 = vmul.f32 %v2266_v1, %v373_v46  ;;  %v1098_v58 = vmul.f32 %v2315_v15, %v2379_v50  ;;  %v2397_v60 = vld [vmem:[%s2288_s14 + $0x21] sm:$0xff]  ;;  %v682_v0 = vmul.f32 %v2281_v4, %v2388_v55  ;;  %v458_v10 = vld [vmem:[%s2288_s14 + $0xc9] sm:$0xff] }
  0x18   : > { %v713_v49 = vadd.f32 %v681_v17, %v611_v35  ;;  %v1197_v59 = vmul.f32 %v2320_v16, %v2382_v51  ;;  %v2400_v61 = vld [vmem:[%s2288_s14 + $0x22] sm:$0xff]  ;;  %v783_v8 = vmul.f32 %v2293_v5, %v2397_v60  ;;  %v559_v11 = vld [vmem:[%s2288_s14 + $0xca] sm:$0xff]  ;;  %v2412_v14 = vld [vmem:[%s2288_s14 + $0x38] sm:$0xff]  ;;  %v495_v18 = vmul.f32 %v2271_v2, %v458_v10 }
  0x19   : > { %v627_v56 = vadd.f32 %v595_v33, %v526_v42  ;;  %v511_v63 = vadd.f32 %v479_v53, %v410_v52  ;;  %v389_v9 = vld [vmem:[%s2288_s14 + $0xc8] sm:$0xff]  ;;  %v884_v13 = vmul.f32 %v2298_v6, %v2400_v61  ;;  %v2417_v21 = vld [vmem:[%s2288_s14 + $0xe0] sm:$0xff]  ;;  %v984_v25 = vmul.f32 %v2303_v7, %v2412_v14 }
  0x1a   : > { %v814_v62 = vadd.f32 %v782_v22, %v713_v49  ;;  %v426_v17 = vmul.f32 %v2266_v1, %v389_v9  ;;  %v2422_v26 = vld [vmem:[%s2288_s14 + $0x39] sm:$0xff]  ;;  %v596_v31 = vmul.f32 %v2276_v3, %v559_v11  ;;  %v2440_v49 = vld [vmem:[%s2288_s14 + $0xe2] sm:$0xff]  ;;  %v581_v9 = vmul.f32 %v2325_v19, %v2276_v3 }
  0x1b   : > { %v729_v12 = vadd.f32 %v697_v43, %v627_v56  ;;  %v612_v24 = vadd.f32 %v580_v54, %v511_v63  ;;  %v1083_v33 = vmul.f32 %v2315_v15, %v2422_v26  ;;  %v2428_v35 = vld [vmem:[%s2288_s14 + $0x3a] sm:$0xff]  ;;  %v900_v54 = vmul.f32 %v2298_v6, %v2440_v49 }
  0x1c   : > { %v915_v22 = vadd.f32 %v883_v23, %v814_v62  ;;  %v527_v42 = vadd.f32 %v495_v18, %v426_v17  ;;  %v698_v23 = vmul.f32 %v2281_v4, %v2417_v21  ;;  %v2433_v43 = vld [vmem:[%s2288_s14 + $0xe1] sm:$0xff]  ;;  %v1182_v48 = vmul.f32 %v2320_v16, %v2428_v35 }
  0x1d   : > { %v830_v32 = vadd.f32 %v798_v44, %v729_v12  ;;  %v714_v47 = vadd.f32 %v682_v0, %v612_v24  ;;  %v799_v44 = vmul.f32 %v2293_v5, %v2433_v43  ;;  %v512_v56 = vadd.f32 %v480_v41, %v2337_v27  ;;  %v2449_v0 = vld [vmem:[%s2288_s14 + $0xf9] sm:$0xff] }
  0x1e   : > { %v1015_v46 = vadd.f32 %v983_v28, %v915_v22  ;;  %v628_v53 = vadd.f32 %v596_v31, %v527_v42  ;;  %v2446_v28 = vld [vmem:[%s2288_s14 + $0xf8] sm:$0xff]  ;;  %v683_v10 = vmul.f32 %v2328_v20, %v2281_v4  ;;  %v784_v18 = vmul.f32 %v2342_v29, %v2293_v5 }
  0x1f   : > { %v931_v52 = vadd.f32 %v899_v45, %v830_v32  ;;  %v815_v63 = vadd.f32 %v783_v8, %v714_v47  ;;  %v2458_v45 = vld [vmem:[%s3418_s3] ss:$0 sm:$0xff]  ;;  %v1000_v27 = vmul.f32 %v2303_v7, %v2446_v28  ;;  %v613_v17 = vadd.f32 %v581_v9, %v512_v56  ;;  %v2478_v47 = vld [vmem:[%s2288_s14 + $0x48] sm:$0xff] }
  0x20   : > { %v1114_v62 = vadd.f32 %v1082_v36, %v1015_v46  ;;  %v730_v12 = vadd.f32 %v698_v23, %v628_v53  ;;  %v1099_v36 = vmul.f32 %v2315_v15, %v2449_v0  ;;  %v2466_v8 = vld [vmem:[%s2288_s14 + $0xfa] sm:$0xff]  ;;  %v885_v31 = vmul.f32 %v2345_v30, %v2298_v6 }
  0x21   : > { %v1031_v11 = vadd.f32 %v999_v57, %v931_v52  ;;  %v916_v19 = vadd.f32 %v884_v13, %v815_v63  ;;  %v1198_v57 = vmul.f32 %v2320_v16, %v2466_v8  ;;  %v715_v13 = vadd.f32 %v683_v10, %v613_v17 }
  0x22   : > { %v1213_v41 = vadd.f32 %v2357_v37, %v1114_v62  ;;  %v831_v24 = vadd.f32 %v799_v44, %v730_v12  ;;  %v427_v42 = vmul.f32 %v2351_v34, %v2266_v1  ;;  %v597_v44 = vmul.f32 %v2363_v39, %v2276_v3  ;;  %v2488_v34 = vld [vmem:[%s2288_s14 + $0x49] sm:$0xff] }
  0x23   : > { %v1130_v22 = vadd.f32 %v1098_v58, %v1031_v11  ;;  %v1016_v37 = vadd.f32 %v984_v25, %v916_v19  ;;  %v496_v58 = vmul.f32 %v2360_v38, %v2271_v2  ;;  %v816_v56 = vadd.f32 %v784_v18, %v715_v13 }
  0x24   : > { %v1252_v32 = vadd.f32 %v2458_v45, %v1213_v41  ;;  %v932_v46 = vadd.f32 %v900_v54, %v831_v24  ;;  %v985_v25 = vmul.f32 %v2303_v7, %v2478_v47  ;;  %v699_v38 = vmul.f32 %v2366_v40, %v2281_v4 }
  0x25   : > { %v1229_v23 = vadd.f32 %v1197_v59, %v1130_v22  ;;  %v1115_v53 = vadd.f32 %v1083_v33, %v1016_v37  ;;  %v2491_v59 = vld [vmem:[%s2288_s14 + $0x4a] sm:$0xff]  ;;  %v528_v54 = vadd.f32 %v496_v58, %v427_v42  ;;  %v917_v33 = vadd.f32 %v885_v31, %v816_v56 }
  0x26   : > { %v1284_v52 = vmax.f32 %v1252_v32, 0.0  ;;  %v1032_v63 = vadd.f32 %v1000_v27, %v932_v46  ;;  %v1084_v9 = vmul.f32 %v2315_v15, %v2488_v34  ;;  %v1183_v10 = vmul.f32 %v2320_v16, %v2491_v59  ;;  %v2519_v46 = vld [vmem:[%s2288_s14 + $0x109] sm:$0xff] }
  0x27   : > { %v1268_v62 = vadd.f32 %v2458_v45, %v1229_v23  ;;  %v1214_v39 = vadd.f32 %v1182_v48, %v1115_v53  ;;  %v629_v27 = vadd.f32 %v597_v44, %v528_v54  ;;  %v800_v41 = vmul.f32 %v2379_v50, %v2293_v5 }
  0x28   : > { %2093 = vmatprep.mubr.msk.f32.mxu0 %vm1324_vm1, %v1284_v52  ;;  %v1131_v12 = vadd.f32 %v1099_v36, %v1032_v63  ;;  %v1017_v17 = vadd.f32 %v985_v25, %v917_v33  ;;  %v901_v48 = vmul.f32 %v2382_v51, %v2298_v6  ;;  %v412_v18 = vmul.f32 %v2388_v55, %v2266_v1  ;;  %v2509_v36 = vld [vmem:[%s2288_s14 + $0x108] sm:$0xff]  ;;  %v2542_v33 = vld [vmem:[%s2288_s14 + $0x51] sm:$0xff] }
  0x29   : > { %v1300_v11 = vmax.f32 %v1268_v62, 0.0  ;;  %v1253_v19 = vadd.f32 %v2458_v45, %v1214_v39  ;;  %v731_v24 = vadd.f32 %v699_v38, %v629_v27  ;;  %v481_v31 = vmul.f32 %v2397_v60, %v2271_v2  ;;  %v2539_v39 = vld [vmem:[%s2288_s14 + $0x50] sm:$0xff] }
  0x2a   : > { %v1230_v22 = vadd.f32 %v1198_v57, %v1131_v12  ;;  %v582_v32 = vmul.f32 %v2400_v61, %v2276_v3  ;;  %v1116_v13 = vadd.f32 %v1084_v9, %v1017_v17  ;;  %v1001_v42 = vmul.f32 %v2303_v7, %v2509_v36  ;;  %v2522_v57 = vld [vmem:[%s2288_s14 + $0x10a] sm:$0xff] }
  0x2b   : > { %2117 = vmatprep.mubr.msk.f32.mxu1 %vm1324_vm1, %v1300_v11  ;;  %v1285_v37 = vmax.f32 %v1253_v19, 0.0  ;;  %v832_v55 = vadd.f32 %v800_v41, %v731_v24  ;;  %v513_v58 = vadd.f32 %v481_v31, %v412_v18  ;;  %v684_v60 = vmul.f32 %v2412_v14, %v2281_v4  ;;  %v2554_v41 = vld [vmem:[%s2288_s14 + $0x52] sm:$0xff] }
  0x2c   : > { %v1269_v23 = vadd.f32 %v2458_v45, %v1230_v22  ;;  %v1215_v61 = vadd.f32 %v1183_v10, %v1116_v13  ;;  %v1100_v44 = vmul.f32 %v2315_v15, %v2519_v46  ;;  %v1199_v52 = vmul.f32 %v2320_v16, %v2522_v57  ;;  %v2571_v13 = vld [vmem:[%s2288_s14 + $0x111] sm:$0xff] }
  0x2d   : > { %2094 = vmatmul.mubr.msk.f32.vlgmr.msra.gmra.mxu0 %vm1324_vm1, %v1285_v37  ;;  %v785_v53 = vmul.f32 %v2422_v26, %v2293_v5  ;;  %v933_v25 = vadd.f32 %v901_v48, %v832_v55  ;;  %v614_v62 = vadd.f32 %v582_v32, %v513_v58  ;;  %v428_v63 = vmul.f32 %v2417_v21, %v2266_v1  ;;  %v2568_v37 = vld [vmem:[%s2288_s14 + $0x110] sm:$0xff] }
  0x2e   : > { %v1301_v56 = vmax.f32 %v1269_v23, 0.0  ;;  %v1254_v54 = vadd.f32 %v2458_v45, %v1215_v61  ;;  %v886_v38 = vmul.f32 %v2428_v35, %v2298_v6  ;;  %v497_v9 = vmul.f32 %v2433_v43, %v2271_v2  ;;  %v2582_v61 = vld [vmem:[%s2288_s14 + $0x112] sm:$0xff] }
  0x2f   : > { %v598_v10 = vmul.f32 %v2440_v49, %v2276_v3  ;;  %v1033_v11 = vadd.f32 %v1001_v42, %v933_v25  ;;  %v716_v21 = vadd.f32 %v684_v60, %v614_v62  ;;  %v986_v12 = vmul.f32 %v2303_v7, %v2539_v39 }
  0x30   : > { %2118 = vmatmul.mubr.msk.f32.vlgmr.msra.gmra.mxu1 %vm1324_vm1, %v1301_v56  ;;  %v1085_v27 = vmul.f32 %v2315_v15, %v2542_v33  ;;  %v1286_v19 = vmax.f32 %v1254_v54, 0.0  ;;  %v1184_v43 = vmul.f32 %v2320_v16, %v2554_v41  ;;  %v529_v17 = vadd.f32 %v497_v9, %v428_v63 }
  0x31   : > { %v700_v49 = vmul.f32 %v2446_v28, %v2281_v4  ;;  %v1132_v48 = vadd.f32 %v1100_v44, %v1033_v11  ;;  %v817_v18 = vadd.f32 %v785_v53, %v716_v21  ;;  %v801_v22 = vmul.f32 %v2449_v0, %v2293_v5 }
  0x32   : > { %v413_v24 = vmul.f32 %v2328_v20, %v2266_v1  ;;  %2096 = vmatprep.mubr.msk.f32.mxu0 %vm1324_vm1, %v1286_v19  ;;  %v630_v31 = vadd.f32 %v598_v10, %v529_v17  ;;  %v902_v32 = vmul.f32 %v2466_v8, %v2298_v6  ;;  %v482_v42 = vmul.f32 %v2342_v29, %v2271_v2 }
  0x33   : > { %v583_v23 = vmul.f32 %v2345_v30, %v2276_v3  ;;  %v1231_v55 = vadd.f32 %v1199_v52, %v1132_v48  ;;  %v918_v58 = vadd.f32 %v886_v38, %v817_v18  ;;  %v1002_v20 = vmul.f32 %v2303_v7, %v2568_v37  ;;  %v2594_v38 = vld [vmem:[%s2288_s14 + $0x60] sm:$0xff] }
  0x34   : > { %v1101_v60 = vmul.f32 %v2315_v15, %v2571_v13  ;;  %v732_v44 = vadd.f32 %v700_v49, %v630_v31  ;;  %v1200_v53 = vmul.f32 %v2320_v16, %v2582_v61  ;;  %v514_v56 = vadd.f32 %v482_v42, %v413_v24  ;;  %v2605_v49 = vld [vmem:[%s2288_s14 + $0x61] sm:$0xff] }
  0x35   : > { %v685_v29 = vmul.f32 %v2478_v47, %v2281_v4  ;;  %v1270_v30 = vadd.f32 %v2458_v45, %v1231_v55  ;;  %v1018_v52 = vadd.f32 %v986_v12, %v918_v58  ;;  %v786_v25 = vmul.f32 %v2488_v34, %v2293_v5  ;;  %v2608_v48 = vld [vmem:[%s2288_s14 + $0x62] sm:$0xff] }
  0x36   : > { %v429_v62 = vmul.f32 %v2366_v40, %v2266_v1  ;;  %v833_v63 = vadd.f32 %v801_v22, %v732_v44  ;;  %v615_v54 = vadd.f32 %v583_v23, %v514_v56  ;;  %v498_v9 = vmul.f32 %v2379_v50, %v2271_v2  ;;  %v2625_v58 = vld [vmem:[%s2288_s14 + $0x120] sm:$0xff] }
  0x37   : > { %v599_v10 = vmul.f32 %v2382_v51, %v2276_v3  ;;  %v1302_v11 = vmax.f32 %v1270_v30, 0.0  ;;  %v1117_v21 = vadd.f32 %v1085_v27, %v1018_v52  ;;  %v887_v12 = vmul.f32 %v2491_v59, %v2298_v6 }
  0x38   : > { %v987_v19 = vmul.f32 %v2303_v7, %v2594_v38  ;;  %v934_v17 = vadd.f32 %v902_v32, %v833_v63  ;;  %v717_v40 = vadd.f32 %v685_v29, %v615_v54  ;;  %v530_v18 = vadd.f32 %v498_v9, %v429_v62  ;;  %v2639_v63 = vld [vmem:[%s2288_s14 + $0x122] sm:$0xff] }
  0x39   : > { %v701_v50 = vmul.f32 %v2509_v36, %v2281_v4  ;;  %2120 = vmatprep.mubr.msk.f32.mxu1 %vm1324_vm1, %v1302_v11  ;;  %v1216_v51 = vadd.f32 %v1184_v43, %v1117_v21  ;;  %v1086_v27 = vmul.f32 %v2315_v15, %v2605_v49  ;;  %v1185_v22 = vmul.f32 %v2320_v16, %v2608_v48 }
  0x3a   : > { %v802_v24 = vmul.f32 %v2519_v46, %v2293_v5  ;;  %v1034_v31 = vadd.f32 %v1002_v20, %v934_v17  ;;  %v818_v32 = vadd.f32 %v786_v25, %v717_v40  ;;  %v631_v42 = vadd.f32 %v599_v10, %v530_v18 }
  0x3b   : > { %v414_v23 = vmul.f32 %v2412_v14, %v2266_v1  ;;  %v1255_v55 = vadd.f32 %v2458_v45, %v1216_v51  ;;  %v903_v43 = vmul.f32 %v2522_v57, %v2298_v6  ;;  %v483_v44 = vmul.f32 %v2422_v26, %v2271_v2  ;;  %v2634_v14 = vld [vmem:[%s2288_s14 + $0x121] sm:$0xff] }
  0x3c   : > { %v584_v56 = vmul.f32 %v2428_v35, %v2276_v3  ;;  %v1133_v20 = vadd.f32 %v1101_v60, %v1034_v31  ;;  %v919_v29 = vadd.f32 %v887_v12, %v818_v32  ;;  %v733_v30 = vadd.f32 %v701_v50, %v631_v42 }
  0x3d   : > { %v1003_v52 = vmul.f32 %v2303_v7, %v2625_v58  ;;  %v1287_v25 = vmax.f32 %v1255_v55, 0.0  ;;  %v1102_v62 = vmul.f32 %v2315_v15, %v2634_v14  ;;  %v515_v54 = vadd.f32 %v483_v44, %v414_v23  ;;  %v2665_v23 = vld [vmem:[%s2288_s14 + $0x69] sm:$0xff] }
  0x3e   : > { %v686_v26 = vmul.f32 %v2539_v39, %v2281_v4  ;;  %v1232_v35 = vadd.f32 %v1200_v53, %v1133_v20  ;;  %v1019_v60 = vadd.f32 %v987_v19, %v919_v29  ;;  %v834_v9 = vadd.f32 %v802_v24, %v733_v30  ;;  %v2658_v24 = vld [vmem:[%s2288_s14 + $0x68] sm:$0xff] }
  0x3f   : > { %v1201_v10 = vmul.f32 %v2320_v16, %v2639_v63  ;;  %2097 = vmatmul.mubr.msk.f32.gmra.mxu0 %vm1324_vm1, %v1287_v25  ;;  %v616_v11 = vadd.f32 %v584_v56, %v515_v54  ;;  %v787_v21 = vmul.f32 %v2542_v33, %v2293_v5  ;;  %v430_v12 = vmul.f32 %v2446_v28, %v2266_v1  ;;  %v2681_v54 = vld [vmem:[%s2288_s14 + $0x128] sm:$0xff] }
  0x40   : > { %v499_v17 = vmul.f32 %v2449_v0, %v2271_v2  ;;  %v1271_v53 = vadd.f32 %v2458_v45, %v1232_v35  ;;  %v1118_v19 = vadd.f32 %v1086_v27, %v1019_v60  ;;  %v935_v40 = vadd.f32 %v903_v43, %v834_v9 }
  0x41   : > { %v600_v18 = vmul.f32 %v2466_v8, %v2276_v3  ;;  %v718_v50 = vadd.f32 %v686_v26, %v616_v11  ;;  %v888_v51 = vmul.f32 %v2554_v41, %v2298_v6  ;;  %v702_v28 = vmul.f32 %v2568_v37, %v2281_v4 }
  0x42   : > { %v531_v31 = vadd.f32 %v499_v17, %v430_v12  ;;  %v1303_v32 = vmax.f32 %v1271_v53, 0.0  ;;  %v1217_v0 = vadd.f32 %v1185_v22, %v1118_v19  ;;  %v1035_v42 = vadd.f32 %v1003_v52, %v935_v40  ;;  %v2678_v52 = vld [vmem:[%s2288_s14 + $0x6a] sm:$0xff] }
  0x43   : > { %v988_v27 = vmul.f32 %v2303_v7, %v2658_v24  ;;  %v819_v8 = vadd.f32 %v787_v21, %v718_v50  ;;  %v1087_v55 = vmul.f32 %v2315_v15, %v2665_v23  ;;  %v803_v44 = vmul.f32 %v2571_v13, %v2293_v5  ;;  %v2692_v12 = vld [vmem:[%s2288_s14 + $0x129] sm:$0xff] }
  0x44   : > { %v632_v43 = vadd.f32 %v600_v18, %v531_v31  ;;  %2121 = vmatmul.mubr.msk.f32.gmra.mxu1 %vm1324_vm1, %v1303_v32  ;;  %v1256_v56 = vadd.f32 %v2458_v45, %v1217_v0  ;;  %v1134_v22 = vadd.f32 %v1102_v62, %v1035_v42  ;;  %v904_v20 = vmul.f32 %v2582_v61, %v2298_v6  ;;  %v2695_v17 = vld [vmem:[%s2288_s14 + $0x12a] sm:$0xff]  ;;  %v2712_v0 = vld [vmem:[%s2288_s14 + $0x78] sm:$0xff] }
  0x45   : > { %v415_v29 = vmul.f32 %v2478_v47, %v2266_v1  ;;  %v920_v30 = vadd.f32 %v888_v51, %v819_v8  ;;  %v484_v26 = vmul.f32 %v2488_v34, %v2271_v2  ;;  %v585_v35 = vmul.f32 %v2491_v59, %v2276_v3 }
  0x46   : > { %v734_v25 = vadd.f32 %v702_v28, %v632_v43  ;;  %v1288_v62 = vmax.f32 %v1256_v56, 0.0  ;;  %v1233_v60 = vadd.f32 %v1201_v10, %v1134_v22  ;;  %v1186_v9 = vmul.f32 %v2320_v16, %v2678_v52  ;;  %v2721_v56 = vld [vmem:[%s2288_s14 + $0x79] sm:$0xff] }
  0x47   : > { %v1004_v47 = vmul.f32 %v2303_v7, %v2681_v54  ;;  %v1020_v11 = vadd.f32 %v988_v27, %v920_v30  ;;  %v516_v53 = vadd.f32 %v484_v26, %v415_v29  ;;  %v687_v34 = vmul.f32 %v2594_v38, %v2281_v4 }
  0x48   : > { %v835_v21 = vadd.f32 %v803_v44, %v734_v25  ;;  %2099 = vmatprep.mubr.msk.f32.mxu0 %vm1324_vm1, %v1288_v62  ;;  %v1272_v59 = vadd.f32 %v2458_v45, %v1233_v60  ;;  %v1103_v10 = vmul.f32 %v2315_v15, %v2692_v12  ;;  %v1202_v19 = vmul.f32 %v2320_v16, %v2695_v17 }
  0x49   : > { %v788_v40 = vmul.f32 %v2605_v49, %v2293_v5  ;;  %v1119_v18 = vadd.f32 %v1087_v55, %v1020_v11  ;;  %v617_v51 = vadd.f32 %v585_v35, %v516_v53  ;;  %v431_v31 = vmul.f32 %v2509_v36, %v2266_v1  ;;  %v2724_v36 = vld [vmem:[%s2288_s14 + $0x7a] sm:$0xff] }
  0x4a   : > { %v936_v50 = vadd.f32 %v904_v20, %v835_v21  ;;  %v1304_v28 = vmax.f32 %v1272_v59, 0.0  ;;  %v889_v32 = vmul.f32 %v2608_v48, %v2298_v6  ;;  %v500_v42 = vmul.f32 %v2519_v46, %v2271_v2 }
  0x4b   : > { %v601_v27 = vmul.f32 %v2522_v57, %v2276_v3  ;;  %v1218_v8 = vadd.f32 %v1186_v9, %v1119_v18  ;;  %v719_v55 = vadd.f32 %v687_v34, %v617_v51  ;;  %v989_v44 = vmul.f32 %v2303_v7, %v2712_v0  ;;  %v2745_v34 = vld [vmem:[%s2288_s14 + $0x138] sm:$0xff] }
  0x4c   : > { %v1036_v43 = vadd.f32 %v1004_v47, %v936_v50  ;;  %2123 = vmatprep.mubr.msk.f32.mxu1 %vm1324_vm1, %v1304_v28  ;;  %v1088_v22 = vmul.f32 %v2315_v15, %v2721_v56  ;;  %v1187_v46 = vmul.f32 %v2320_v16, %v2724_v36  ;;  %v532_v57 = vadd.f32 %v500_v42, %v431_v31 }
  0x4d   : > { %v703_v20 = vmul.f32 %v2625_v58, %v2281_v4  ;;  %v1257_v29 = vadd.f32 %v2458_v45, %v1218_v8  ;;  %v820_v25 = vadd.f32 %v788_v40, %v719_v55  ;;  %v804_v26 = vmul.f32 %v2634_v14, %v2293_v5  ;;  %v2753_v40 = vld [vmem:[%s2288_s14 + $0x13a] sm:$0xff] }
  0x4e   : > { %v1135_v30 = vadd.f32 %v1103_v10, %v1036_v43  ;;  %v633_v35 = vadd.f32 %v601_v27, %v532_v57  ;;  %v416_v62 = vmul.f32 %v2539_v39, %v2266_v1  ;;  %v485_v60 = vmul.f32 %v2542_v33, %v2271_v2  ;;  %v2750_v39 = vld [vmem:[%s2288_s14 + $0x139] sm:$0xff] }
  0x4f   : > { %v586_v9 = vmul.f32 %v2554_v41, %v2276_v3  ;;  %v1289_v47 = vmax.f32 %v1257_v29, 0.0  ;;  %v921_v21 = vadd.f32 %v889_v32, %v820_v25  ;;  %v905_v53 = vmul.f32 %v2639_v63, %v2298_v6  ;;  %v2768_v43 = vld [vmem:[%s2288_s14 + $0x80] sm:$0xff] }
  0x50   : > { %v1234_v11 = vadd.f32 %v1202_v19, %v1135_v30  ;;  %v735_v59 = vadd.f32 %v703_v20, %v633_v35  ;;  %v1005_v10 = vmul.f32 %v2303_v7, %v2745_v34  ;;  %v517_v33 = vadd.f32 %v485_v60, %v416_v62  ;;  %v2779_v25 = vld [vmem:[%s2288_s14 + $0x81] sm:$0xff] }
  0x51   : > { %v688_v41 = vmul.f32 %v2658_v24, %v2281_v4  ;;  %2100 = vmatmul.mubr.msk.f32.gmra.mxu0 %vm1324_vm1, %v1289_v47  ;;  %v1021_v18 = vadd.f32 %v989_v44, %v921_v21  ;;  %v1104_v50 = vmul.f32 %v2315_v15, %v2750_v39  ;;  %v1203_v51 = vmul.f32 %v2320_v16, %v2753_v40 }
  0x52   : > { %v1273_v19 = vadd.f32 %v2458_v45, %v1234_v11  ;;  %v836_v31 = vadd.f32 %v804_v26, %v735_v59  ;;  %v618_v28 = vadd.f32 %v586_v9, %v517_v33  ;;  %v789_v32 = vmul.f32 %v2665_v23, %v2293_v5 }
  0x53   : > { %v432_v42 = vmul.f32 %v2568_v37, %v2266_v1  ;;  %v1120_v8 = vadd.f32 %v1088_v22, %v1021_v18  ;;  %v501_v55 = vmul.f32 %v2571_v13, %v2271_v2  ;;  %v602_v44 = vmul.f32 %v2582_v61, %v2276_v3  ;;  %v2785_v13 = vld [vmem:[%s2288_s14 + $0x82] sm:$0xff] }
  0x54   : > { %v1305_v27 = vmax.f32 %v1273_v19, 0.0  ;;  %v937_v57 = vadd.f32 %v905_v53, %v836_v31  ;;  %v720_v20 = vadd.f32 %v688_v41, %v618_v28  ;;  %v890_v29 = vmul.f32 %v2678_v52, %v2298_v6  ;;  %v2803_v18 = vld [vmem:[%s2288_s14 + $0x140] sm:$0xff] }
  0x55   : > { %v990_v30 = vmul.f32 %v2303_v7, %v2768_v43  ;;  %v1219_v37 = vadd.f32 %v1187_v46, %v1120_v8  ;;  %v1089_v22 = vmul.f32 %v2315_v15, %v2779_v25  ;;  %v533_v26 = vadd.f32 %v501_v55, %v432_v42  ;;  %v2806_v31 = vld [vmem:[%s2288_s14 + $0x141] sm:$0xff] }
  0x56   : > { %2124 = vmatmul.mubr.msk.f32.gmra.mxu1 %vm1324_vm1, %v1305_v27  ;;  %v704_v61 = vmul.f32 %v2681_v54, %v2281_v4  ;;  %v1037_v35 = vadd.f32 %v1005_v10, %v937_v57  ;;  %v821_v62 = vadd.f32 %v789_v32, %v720_v20  ;;  %v1188_v60 = vmul.f32 %v2320_v16, %v2785_v13  ;;  %v2815_v27 = vld [vmem:[%s2288_s14 + $0x142] sm:$0xff] }
  0x57   : > { %v805_v9 = vmul.f32 %v2692_v12, %v2293_v5  ;;  %v1258_v46 = vadd.f32 %v2458_v45, %v1219_v37  ;;  %v634_v47 = vadd.f32 %v602_v44, %v533_v26  ;;  %v417_v11 = vmul.f32 %v2594_v38, %v2266_v1 }
  0x58   : > { %v486_v21 = vmul.f32 %v2605_v49, %v2271_v2  ;;  %v1136_v53 = vadd.f32 %v1104_v50, %v1037_v35  ;;  %v922_v59 = vadd.f32 %v890_v29, %v821_v62  ;;  %v906_v10 = vmul.f32 %v2695_v17, %v2298_v6 }
  0x59   : > { %v587_v33 = vmul.f32 %v2608_v48, %v2276_v3  ;;  %v1290_v41 = vmax.f32 %v1258_v46, 0.0  ;;  %v736_v19 = vadd.f32 %v704_v61, %v634_v47  ;;  %v689_v38 = vmul.f32 %v2712_v0, %v2281_v4 }
  0x5a   : > { %v518_v28 = vadd.f32 %v486_v21, %v417_v11  ;;  %v1235_v32 = vadd.f32 %v1203_v51, %v1136_v53  ;;  %v1022_v49 = vadd.f32 %v990_v30, %v922_v59  ;;  %v1006_v50 = vmul.f32 %v2303_v7, %v2803_v18  ;;  %v2844_v53 = vld [vmem:[%s2288_s14 + $0x92] sm:$0xff] }
  0x5b   : > { %v1105_v42 = vmul.f32 %v2315_v15, %v2806_v31  ;;  %2102 = vmatprep.mubr.msk.f32.mxu0 %vm1324_vm1, %v1290_v41  ;;  %v837_v48 = vadd.f32 %v805_v9, %v736_v19  ;;  %v1204_v8 = vmul.f32 %v2320_v16, %v2815_v27  ;;  %v790_v51 = vmul.f32 %v2721_v56, %v2293_v5  ;;  %v2832_v9 = vld [vmem:[%s2288_s14 + $0x90] sm:$0xff] }
  0x5c   : > { %v619_v55 = vadd.f32 %v587_v33, %v518_v28  ;;  %v1274_v44 = vadd.f32 %v2458_v45, %v1235_v32  ;;  %v1121_v57 = vadd.f32 %v1089_v22, %v1022_v49  ;;  %v433_v20 = vmul.f32 %v2625_v58, %v2266_v1  ;;  %v2835_v22 = vld [vmem:[%s2288_s14 + $0x91] sm:$0xff] }
  0x5d   : > { %v502_v29 = vmul.f32 %v2634_v14, %v2271_v2  ;;  %v938_v30 = vadd.f32 %v906_v10, %v837_v48  ;;  %v891_v26 = vmul.f32 %v2724_v36, %v2298_v6  ;;  %v603_v61 = vmul.f32 %v2639_v63, %v2276_v3 }
  0x5e   : > { %v721_v37 = vadd.f32 %v689_v38, %v619_v55  ;;  %v1306_v35 = vmax.f32 %v1274_v44, 0.0  ;;  %v1220_v62 = vadd.f32 %v1188_v60, %v1121_v57  ;;  %v705_v58 = vmul.f32 %v2745_v34, %v2281_v4 }
  0x5f   : > { %v534_v46 = vadd.f32 %v502_v29, %v433_v20  ;;  %v1038_v47 = vadd.f32 %v1006_v50, %v938_v30  ;;  %v991_v11 = vmul.f32 %v2303_v7, %v2832_v9  ;;  %v1090_v21 = vmul.f32 %v2315_v15, %v2835_v22 }
  0x60   : > { %v822_v14 = vadd.f32 %v790_v51, %v721_v37  ;;  %2126 = vmatprep.mubr.msk.f32.mxu1 %vm1324_vm1, %v1306_v35  ;;  %v1259_v63 = vadd.f32 %v2458_v45, %v1220_v62  ;;  %v1189_v60 = vmul.f32 %v2320_v16, %v2844_v53  ;;  %v806_v10 = vmul.f32 %v2750_v39, %v2293_v5  ;;  %v2861_v51 = vld [vmem:[%s2288_s14 + $0x150] sm:$0xff] }
  0x61   : > { %v635_v59 = vadd.f32 %v603_v61, %v534_v46  ;;  %v1137_v33 = vadd.f32 %v1105_v42, %v1038_v47  ;;  %v418_v19 = vmul.f32 %v2658_v24, %v2266_v1  ;;  %v487_v28 = vmul.f32 %v2665_v23, %v2271_v2  ;;  %v2864_v42 = vld [vmem:[%s2288_s14 + $0x151] sm:$0xff] }
  0x62   : > { %v923_v41 = vadd.f32 %v891_v26, %v822_v14  ;;  %v1291_v38 = vmax.f32 %v1259_v63, 0.0  ;;  %v907_v49 = vmul.f32 %v2753_v40, %v2298_v6  ;;  %v588_v50 = vmul.f32 %v2678_v52, %v2276_v3  ;;  %v2893_v63 = vld [vmem:[%s2288_s14 + $0x99] sm:$0xff] }
  0x63   : > { %v737_v32 = vadd.f32 %v705_v58, %v635_v59  ;;  %v1236_v48 = vadd.f32 %v1204_v8, %v1137_v33  ;;  %v519_v44 = vadd.f32 %v487_v28, %v418_v19  ;;  %v690_v24 = vmul.f32 %v2768_v43, %v2281_v4  ;;  %v2883_v58 = vld [vmem:[%s2288_s14 + $0x152] sm:$0xff] }
  0x64   : > { %v1023_v55 = vadd.f32 %v991_v11, %v923_v41  ;;  %2103 = vmatmul.mubr.msk.f32.gmra.mxu0 %vm1324_vm1, %v1291_v38  ;;  %v1007_v57 = vmul.f32 %v2303_v7, %v2861_v51  ;;  %v1106_v52 = vmul.f32 %v2315_v15, %v2864_v42  ;;  %v791_v30 = vmul.f32 %v2779_v25, %v2293_v5 }
  0x65   : > { %v838_v23 = vadd.f32 %v806_v10, %v737_v32  ;;  %v1275_v8 = vadd.f32 %v2458_v45, %v1236_v48  ;;  %v620_v29 = vadd.f32 %v588_v50, %v519_v44  ;;  %v434_v26 = vmul.f32 %v2681_v54, %v2266_v1  ;;  %v2890_v54 = vld [vmem:[%s2288_s14 + $0x98] sm:$0xff] }
  0x66   : > { %v1122_v20 = vadd.f32 %v1090_v21, %v1023_v55  ;;  %v503_v61 = vmul.f32 %v2692_v12, %v2271_v2  ;;  %v604_v35 = vmul.f32 %v2695_v17, %v2276_v3  ;;  %v892_v14 = vmul.f32 %v2785_v13, %v2298_v6  ;;  %v2908_v50 = vld [vmem:[%s2288_s14 + $0x9a] sm:$0xff] }
  0x67   : > { %v939_v37 = vadd.f32 %v907_v49, %v838_v23  ;;  %v1307_v62 = vmax.f32 %v1275_v8, 0.0  ;;  %v722_v47 = vadd.f32 %v690_v24, %v620_v29  ;;  %v1205_v21 = vmul.f32 %v2320_v16, %v2883_v58 }
  0x68   : > { %v1221_v46 = vadd.f32 %v1189_v60, %v1122_v20  ;;  %v535_v12 = vadd.f32 %v503_v61, %v434_v26  ;;  %v706_v17 = vmul.f32 %v2803_v18, %v2281_v4  ;;  %v992_v10 = vmul.f32 %v2303_v7, %v2890_v54 }
  0x69   : > { %v1039_v11 = vadd.f32 %v1007_v57, %v939_v37  ;;  %2127 = vmatmul.mubr.msk.f32.gmra.mxu1 %vm1324_vm1, %v1307_v62  ;;  %v823_v59 = vadd.f32 %v791_v30, %v722_v47  ;;  %v1091_v33 = vmul.f32 %v2315_v15, %v2893_v63  ;;  %v807_v28 = vmul.f32 %v2806_v31, %v2293_v5 }
  0x6a   : > { %v1260_v60 = vadd.f32 %v2458_v45, %v1221_v46  ;;  %v636_v19 = vadd.f32 %v604_v35, %v535_v12  ;;  %v419_v38 = vmul.f32 %v2712_v0, %v2266_v1  ;;  %v488_v48 = vmul.f32 %v2721_v56, %v2271_v2  ;;  %v2925_v56 = vld [vmem:[%s2288_s14 + $0x159] sm:$0xff] }
  0x6b   : > { %v1138_v41 = vadd.f32 %v1106_v52, %v1039_v11  ;;  %v924_v49 = vadd.f32 %v892_v14, %v823_v59  ;;  %v589_v55 = vmul.f32 %v2724_v36, %v2276_v3  ;;  %v1190_v24 = vmul.f32 %v2320_v16, %v2908_v50  ;;  %v2919_v52 = vld [vmem:[%s2288_s14 + $0x158] sm:$0xff]  ;;  %v2946_v59 = vld [vmem:[%s2288_s14 + $0xa8] sm:$0xff] }
  0x6c   : > { %v1292_v32 = vmax.f32 %v1260_v60, 0.0  ;;  %v738_v23 = vadd.f32 %v706_v17, %v636_v19  ;;  %v908_v57 = vmul.f32 %v2815_v27, %v2298_v6  ;;  %v1008_v8 = vmul.f32 %v2303_v7, %v2919_v52  ;;  %v2943_v17 = vld [vmem:[%s2288_s14 + $0x15a] sm:$0xff] }
  0x6d   : > { %v1237_v44 = vadd.f32 %v1205_v21, %v1138_v41  ;;  %v1024_v0 = vadd.f32 %v992_v10, %v924_v49  ;;  %v520_v36 = vadd.f32 %v488_v48, %v419_v38  ;;  %v691_v20 = vmul.f32 %v2832_v9, %v2281_v4  ;;  %v2949_v10 = vld [vmem:[%s2288_s14 + $0xa9] sm:$0xff]  ;;  %v2966_v38 = vld [vmem:[%s3417_s2] ss:$0 sm:$0xff] }
  0x6e   : > { %2105 = vmatprep.mubr.msk.f32.mxu0 %vm1324_vm1, %v1292_v32  ;;  %v839_v30 = vadd.f32 %v807_v28, %v738_v23  ;;  %v1107_v37 = vmul.f32 %v2315_v15, %v2925_v56  ;;  %v792_v26 = vmul.f32 %v2835_v22, %v2293_v5  ;;  %v435_v62 = vmul.f32 %v2745_v34, %v2266_v1 }
  0x6f   : > { %v1276_v29 = vadd.f32 %v2458_v45, %v1237_v44  ;;  %v1123_v61 = vadd.f32 %v1091_v33, %v1024_v0  ;;  %v621_v35 = vadd.f32 %v589_v55, %v520_v36  ;;  %v504_v46 = vmul.f32 %v2750_v39, %v2271_v2  ;;  %v2980_v55 = vld [vmem:[%s2288_s14 + $0xaa] sm:$0xff]  ;;  %v3000_v0 = vld [vmem:[%s3417_s2 + $0x3] ss:$0 sm:$0xff] }
  0x70   : > { %v940_v14 = vadd.f32 %v908_v57, %v839_v30  ;;  %v893_v11 = vmul.f32 %v2844_v53, %v2298_v6  ;;  %v605_v21 = vmul.f32 %v2753_v40, %v2276_v3  ;;  %v707_v2 = vmul.f32 %v2861_v51, %v2281_v4  ;;  %v2992_v57 = vld [vmem:[%s2288_s14 + $0x168] sm:$0xff]  ;;  %v3015_v30 = vld [vmem:[%s3417_s2 + $0x7] ss:$0 sm:$0xff] }
  0x71   : > { %v1308_v47 = vmax.f32 %v1276_v29, 0.0  ;;  %v1222_v12 = vadd.f32 %v1190_v24, %v1123_v61  ;;  %v723_v60 = vadd.f32 %v691_v20, %v621_v35  ;;  %v536_v1 = vadd.f32 %v504_v46, %v435_v62  ;;  %v3023_v35 = vld [vmem:[%s3417_s2 + $0x4] ss:$0 sm:$0xff] }
  0x72   : > { %v1040_v34 = vadd.f32 %v1008_v8, %v940_v14  ;;  %v1206_v6 = vmul.f32 %v2320_v16, %v2943_v17  ;;  %v993_v39 = vmul.f32 %v2303_v7, %v2946_v59  ;;  %v1092_v40 = vmul.f32 %v2315_v15, %v2949_v10  ;;  %v2973_v15 = vld [vmem:[%s3417_s2 + $0x1] ss:$0 sm:$0xff] }
  0x73   : > { %2129 = vmatprep.mubr.msk.f32.mxu1 %vm1324_vm1, %v1308_v47  ;;  %v1261_v33 = vadd.f32 %v2458_v45, %v1222_v12  ;;  %v824_v41 = vadd.f32 %v792_v26, %v723_v60  ;;  %v637_v19 = vadd.f32 %v605_v21, %v536_v1  ;;  %v808_v4 = vmul.f32 %v2864_v42, %v2293_v5  ;;  %v3037_v12 = vld [vmem:[%s3417_s2 + $0x2] ss:$0 sm:$0xff] }
  0x74   : > { %v1139_v28 = vadd.f32 %v1107_v37, %v1040_v34  ;;  %v420_v7 = vmul.f32 %v2966_v38, %v2768_v43  ;;  %v489_v32 = vmul.f32 %v2973_v15, %v2779_v25  ;;  %v590_v5 = vmul.f32 %v2785_v13, %v2276_v3  ;;  %v2985_v43 = vld [vmem:[%s3417_s2 + $0x5] ss:$0 sm:$0xff]  ;;  %v2995_v3 = vld [vmem:[%s2288_s14 + $0x169] sm:$0xff] }
  0x75   : > { %v1293_v49 = vmax.f32 %v1261_v33, 0.0  ;;  %v925_v48 = vadd.f32 %v893_v11, %v824_v41  ;;  %v739_v44 = vadd.f32 %v707_v2, %v637_v19  ;;  %v909_v24 = vmul.f32 %v2985_v43, %v2883_v58  ;;  %v3030_v11 = vld [vmem:[%s2288_s14 + $0x16a] sm:$0xff] }
  0x76   : > { %v1238_v23 = vadd.f32 %v1206_v6, %v1139_v28  ;;  %v1191_v25 = vmul.f32 %v2320_v16, %v2980_v55  ;;  %v521_v13 = vadd.f32 %v489_v32, %v420_v7  ;;  %v692_v8 = vmul.f32 %v3000_v0, %v2890_v54  ;;  %v3008_v16 = vld [vmem:[%s3417_s2 + $0x6] ss:$0 sm:$0xff]  ;;  %v3054_v33 = vld [vmem:[%s2288_s14 + $0xb1] sm:$0xff] }
  0x77   : > { %2106 = vmatmul.mubr.msk.f32.gmra.mxu0 %vm1324_vm1, %v1293_v49  ;;  %v1025_v36 = vadd.f32 %v993_v39, %v925_v48  ;;  %v840_v20 = vadd.f32 %v808_v4, %v739_v44  ;;  %v1009_v29 = vmul.f32 %v3008_v16, %v2992_v57  ;;  %v1108_v37 = vmul.f32 %v3015_v30, %v2995_v3  ;;  %v3067_v49 = vld [vmem:[%s2288_s14 + $0xb2] sm:$0xff] }
  0x78   : > { %v1277_v26 = vadd.f32 %v2458_v45, %v1238_v23  ;;  %v622_v61 = vadd.f32 %v590_v5, %v521_v13  ;;  %v793_v62 = vmul.f32 %v3023_v35, %v2893_v63  ;;  %v436_v46 = vmul.f32 %v2966_v38, %v2803_v18  ;;  %v3044_v18 = vld [vmem:[%s3417_s2 + $0x8] ss:$0 sm:$0xff] }
  0x79   : > { %v1124_v47 = vadd.f32 %v1092_v40, %v1025_v36  ;;  %v941_v14 = vadd.f32 %v909_v24, %v840_v20  ;;  %v505_v21 = vmul.f32 %v2973_v15, %v2806_v31  ;;  %v606_v60 = vmul.f32 %v3037_v12, %v2815_v27  ;;  %v3051_v40 = vld [vmem:[%s2288_s14 + $0xb0] sm:$0xff] }
  0x7a   : > { %v1309_v1 = vmax.f32 %v1277_v26, 0.0  ;;  %v1207_v2 = vmul.f32 %v3044_v18, %v3030_v11  ;;  %v724_v34 = vadd.f32 %v692_v8, %v622_v61  ;;  %v894_v31 = vmul.f32 %v2985_v43, %v2908_v50  ;;  %v3085_v61 = vld [vmem:[%s2288_s14 + $0x171] sm:$0xff] }
  0x7b   : > { %v1223_v6 = vadd.f32 %v1191_v25, %v1124_v47  ;;  %v1041_v39 = vadd.f32 %v1009_v29, %v941_v14  ;;  %v537_v27 = vadd.f32 %v505_v21, %v436_v46  ;;  %v708_v41 = vmul.f32 %v3000_v0, %v2919_v52 }
  0x7c   : > { %2130 = vmatmul.mubr.msk.f32.gmra.mxu1 %vm1324_vm1, %v1309_v1  ;;  %v825_v19 = vadd.f32 %v793_v62, %v724_v34  ;;  %v994_v4 = vmul.f32 %v3008_v16, %v3051_v40  ;;  %v1093_v28 = vmul.f32 %v3015_v30, %v3054_v33  ;;  %v809_v7 = vmul.f32 %v3023_v35, %v2925_v56 }
  0x7d   : > { %v1262_v32 = vadd.f32 %v2458_v45, %v1223_v6  ;;  %v1140_v5 = vadd.f32 %v1108_v37, %v1041_v39  ;;  %v638_v48 = vadd.f32 %v606_v60, %v537_v27  ;;  %v421_v44 = vmul.f32 %v2966_v38, %v2832_v9  ;;  %v3080_v37 = vld [vmem:[%s2288_s14 + $0x170] sm:$0xff] }
  0x7e   : > { %v926_v24 = vadd.f32 %v894_v31, %v825_v19  ;;  %v1192_v23 = vmul.f32 %v3044_v18, %v3067_v49  ;;  %v490_v25 = vmul.f32 %v2973_v15, %v2835_v22  ;;  %v591_v13 = vmul.f32 %v3037_v12, %v2844_v53 }
  0x7f   : > { %v1294_v8 = vmax.f32 %v1262_v32, 0.0  ;;  %v1239_v36 = vadd.f32 %v1207_v2, %v1140_v5  ;;  %v740_v20 = vadd.f32 %v708_v41, %v638_v48  ;;  %v910_v29 = vmul.f32 %v2985_v43, %v2943_v17  ;;  %v3106_v41 = vld [vmem:[%s2288_s14 + $0x172] sm:$0xff]  ;;  %v3120_v48 = vld [vmem:[%s2288_s14 + $0xc1] sm:$0xff] }
  0x80   : > { %v1026_v26 = vadd.f32 %v994_v4, %v926_v24  ;;  %v1010_v9 = vmul.f32 %v3008_v16, %v3080_v37  ;;  %v522_v62 = vadd.f32 %v490_v25, %v421_v44  ;;  %v693_v22 = vmul.f32 %v3000_v0, %v2946_v59  ;;  %v3109_v4 = vld [vmem:[%s2288_s14 + $0xc0] sm:$0xff] }
  0x81   : > { %2108 = vmatprep.mubr.msk.f32.mxu0 %vm1324_vm1, %v1294_v8  ;;  %v1278_v53 = vadd.f32 %v2458_v45, %v1239_v36  ;;  %v841_v46 = vadd.f32 %v809_v7, %v740_v20  ;;  %v1109_v47 = vmul.f32 %v3015_v30, %v3085_v61  ;;  %v794_v14 = vmul.f32 %v3023_v35, %v2949_v10 }
  0x82   : > { %v1125_v21 = vadd.f32 %v1093_v28, %v1026_v26  ;;  %v623_v60 = vadd.f32 %v591_v13, %v522_v62  ;;  %v437_v1 = vmul.f32 %v2966_v38, %v2861_v51  ;;  %v506_v2 = vmul.f32 %v2973_v15, %v2864_v42  ;;  %v3136_v26 = vld [vmem:[%s2288_s14 + $0xc2] sm:$0xff] }
  0x83   : > { %v1310_v34 = vmax.f32 %v1278_v53, 0.0  ;;  %v942_v31 = vadd.f32 %v910_v29, %v841_v46  ;;  %v895_v6 = vmul.f32 %v2985_v43, %v2980_v55  ;;  %v607_v39 = vmul.f32 %v3037_v12, %v2883_v58 }
  0x84   : > { %v1224_v27 = vadd.f32 %v1192_v23, %v1125_v21  ;;  %v725_v19 = vadd.f32 %v693_v22, %v623_v60  ;;  %v538_v51 = vadd.f32 %v506_v2, %v437_v1  ;;  %v709_v42 = vmul.f32 %v3000_v0, %v2992_v57  ;;  %v3151_v21 = vld [vmem:[%s3418_s3] ss:$0 sm:$0xff] }
  0x85   : > { %2132 = vmatprep.mubr.msk.f32.mxu1 %vm1324_vm1, %v1310_v34  ;;  %v1042_v28 = vadd.f32 %v1010_v9, %v942_v31  ;;  %v1208_v7 = vmul.f32 %v3044_v18, %v3106_v41  ;;  %v995_v58 = vmul.f32 %v3008_v16, %v3109_v4  ;;  %v810_v24 = vmul.f32 %v3023_v35, %v2995_v3  ;;  %v674_v9 = vld [vmem:[%s3125_s10] sm:$0xff] }
  0x86   : > { %v1263_v32 = vadd.f32 %v2458_v45, %v1224_v27  ;;  %v826_v5 = vadd.f32 %v794_v14, %v725_v19  ;;  %v639_v44 = vadd.f32 %v607_v39, %v538_v51  ;;  %v1094_v25 = vmul.f32 %v3015_v30, %v3120_v48  ;;  %v876_v27 = vld [vmem:[%s3125_s10 + $0x2] sm:$0xff] }
  0x87   : > { %v1141_v23 = vadd.f32 %v1109_v47, %v1042_v28  ;;  %v911_v45 = vmul.f32 %v2985_v43, %v3030_v11  ;;  %v422_v20 = vmul.f32 %v2966_v38, %v2890_v54  ;;  %v491_v62 = vmul.f32 %v2973_v15, %v2893_v63  ;;  %v775_v47 = vld [vmem:[%s3125_s10 + $0x1] sm:$0xff] }
  0x88   : > { %v1295_v13 = vmax.f32 %v1263_v32, 0.0  ;;  %v927_v8 = vadd.f32 %v895_v6, %v826_v5  ;;  %v741_v36 = vadd.f32 %v709_v42, %v639_v44  ;;  %v592_v22 = vmul.f32 %v3037_v12, %v2908_v50  ;;  %v3174_v44 = vld [vmem:[%s2288_s14 + $0xc8] sm:$0xff] }
  0x89   : > { %v1240_v29 = vadd.f32 %v1208_v7, %v1141_v23  ;;  %v1193_v46 = vmul.f32 %v3044_v18, %v3136_v26  ;;  %v1011_v54 = vmul.f32 %v3008_v16, %v674_v9  ;;  %v1110_v50 = vmul.f32 %v3015_v30, %v775_v47 }
  0x8a   : > { %2109 = vmatmul.mubr.msk.f32.gmra.mxu0 %vm1324_vm1, %v1295_v13  ;;  %v1027_v53 = vadd.f32 %v995_v58, %v927_v8  ;;  %v842_v14 = vadd.f32 %v810_v24, %v741_v36  ;;  %v523_v60 = vadd.f32 %v491_v62, %v422_v20  ;;  %v694_v1 = vmul.f32 %v3000_v0, %v3051_v40  ;;  %v3185_v13 = vld [vmem:[%s2288_s14 + $0xc9] sm:$0xff] }
  0x8b   : > { %v1279_v63 = vadd.f32 %v3151_v21, %v1240_v29  ;;  %v795_v31 = vmul.f32 %v3023_v35, %v3054_v33  ;;  %v438_v6 = vmul.f32 %v2966_v38, %v2919_v52  ;;  %v507_v51 = vmul.f32 %v2973_v15, %v2925_v56 }
  0x8c   : > { %v1126_v2 = vadd.f32 %v1094_v25, %v1027_v53  ;;  %v943_v34 = vadd.f32 %v911_v45, %v842_v14  ;;  %v624_v19 = vadd.f32 %v592_v22, %v523_v60  ;;  %v608_v42 = vmul.f32 %v3037_v12, %v2943_v17  ;;  %v675_v14 = vld [vmem:[%s3125_s10 + $0x8] sm:$0xff] }
  0x8d   : > { %v1311_v39 = vmax.f32 %v1279_v63, 0.0  ;;  %v3167_v7 = vmul.f32 %v3000_v0, %v674_v9  ;;  %v1209_v32 = vmul.f32 %v3044_v18, %v876_v27  ;;  %v896_v5 = vmul.f32 %v2985_v43, %v3067_v49 }
  0x8e   : > { %v1225_v28 = vadd.f32 %v1193_v46, %v1126_v2  ;;  %v1043_v58 = vadd.f32 %v1011_v54, %v943_v34  ;;  %v726_v52 = vadd.f32 %v694_v1, %v624_v19  ;;  %v539_v56 = vadd.f32 %v507_v51, %v438_v6 }
  0x8f   : > { %2133 = vmatmul.mubr.msk.f32.gmra.mxu1 %vm1324_vm1, %v1311_v39  ;;  %v710_v17 = vmul.f32 %v3000_v0, %v3080_v37  ;;  %v3180_v23 = vmul.f32 %v3023_v35, %v775_v47  ;;  %v996_v45 = vmul.f32 %v3008_v16, %v3174_v44  ;;  %v1095_v36 = vmul.f32 %v3015_v30, %v3185_v13  ;;  %v3196_v47 = vld [vmem:[%s2288_s14 + $0xca] sm:$0xff] }
  0x90   : > { %v1264_v24 = vadd.f32 %v3151_v21, %v1225_v28  ;;  %v1142_v25 = vadd.f32 %v1110_v50, %v1043_v58  ;;  %v827_v8 = vadd.f32 %v795_v31, %v726_v52  ;;  %v640_v20 = vadd.f32 %v608_v42, %v539_v56  ;;  %v3212_v31 = vld [vmem:[%s3125_s10 + $0x9] sm:$0xff]  ;;  %v1945_v52 = vld [vmem:[%s2288_s14 + $0xd8] sm:$0xff] }
  0x91   : > { %v811_v29 = vmul.f32 %v3023_v35, %v3085_v61  ;;  %v912_v22 = vmul.f32 %v2985_v43, %v3106_v41  ;;  %v423_v53 = vmul.f32 %v2966_v38, %v2946_v59  ;;  %v492_v63 = vmul.f32 %v2973_v15, %v2949_v10  ;;  %v3223_v28 = vld [vmem:[%s3125_s10 + $0xa] sm:$0xff] }
  0x92   : > { %v1296_v9 = vmax.f32 %v1264_v24, 0.0  ;;  %v1241_v62 = vadd.f32 %v1209_v32, %v1142_v25  ;;  %v928_v46 = vadd.f32 %v896_v5, %v827_v8  ;;  %v742_v54 = vadd.f32 %v710_v17, %v640_v20 }
  0x93   : > { %v593_v50 = vmul.f32 %v3037_v12, %v2980_v55  ;;  %v3205_v60 = vmul.f32 %v2985_v43, %v876_v27  ;;  %v1194_v59 = vmul.f32 %v3044_v18, %v3196_v47  ;;  %v1012_v2 = vmul.f32 %v3008_v16, %v675_v14 }
  0x94   : > { %2111 = vmatprep.mubr.msk.f32.mxu0 %vm1324_vm1, %v1296_v9  ;;  %v1280_v1 = vadd.f32 %v3151_v21, %v1241_v62  ;;  %v1028_v34 = vadd.f32 %v996_v45, %v928_v46  ;;  %v843_v10 = vadd.f32 %v811_v29, %v742_v54  ;;  %v524_v6 = vadd.f32 %v492_v63, %v423_v53  ;;  %v1974_v45 = vld [vmem:[%s2288_s14 + $0xd9] sm:$0xff] }
  0x95   : > { %v695_v55 = vmul.f32 %v3000_v0, %v3109_v4  ;;  %v1111_v27 = vmul.f32 %v3015_v30, %v3212_v31  ;;  %v796_v19 = vmul.f32 %v3023_v35, %v3120_v48  ;;  %v439_v51 = vmul.f32 %v2966_v38, %v2992_v57  ;;  %v976_v53 = vld [vmem:[%s3125_s10 + $0x18] sm:$0xff] }
  0x96   : > { %v1312_v39 = vmax.f32 %v1280_v1, 0.0  ;;  %v1127_v42 = vadd.f32 %v1095_v36, %v1028_v34  ;;  %v944_v58 = vadd.f32 %v912_v22, %v843_v10  ;;  %v625_v32 = vadd.f32 %v593_v50, %v524_v6  ;;  %v1075_v1 = vld [vmem:[%s3125_s10 + $0x19] sm:$0xff] }
  0x97   : > { %v508_v4 = vmul.f32 %v2973_v15, %v2995_v3  ;;  %v3230_v5 = vmul.f32 %v3000_v0, %v675_v14  ;;  %v1210_v48 = vmul.f32 %v3044_v18, %v3223_v28  ;;  %v897_v57 = vmul.f32 %v2985_v43, %v3136_v26  ;;  %v2003_v3 = vld [vmem:[%s2288_s14 + $0xda] sm:$0xff] }
  0x98   : > { %2135 = vmatprep.mubr.msk.f32.mxu1 %vm1324_vm1, %v1312_v39  ;;  %v609_v56 = vmul.f32 %v3037_v12, %v3030_v11  ;;  %v1226_v17 = vadd.f32 %v1194_v59, %v1127_v42  ;;  %v1044_v24 = vadd.f32 %v1012_v2, %v944_v58  ;;  %v727_v25 = vadd.f32 %v695_v55, %v625_v32  ;;  %v1946_v55 = vld [vmem:[%s2288_s14 + $0xe0] sm:$0xff] }
  0x99   : > { %v540_v8 = vadd.f32 %v508_v4, %v439_v51  ;;  %v997_v36 = vmul.f32 %v3008_v16, %v1945_v52  ;;  %v424_v20 = vmul.f32 %v2966_v38, %v3051_v40  ;;  %v493_v29 = vmul.f32 %v2973_v15, %v3054_v33  ;;  %v1975_v42 = vld [vmem:[%s2288_s14 + $0xe1] sm:$0xff] }
  0x9a   : > { %v594_v26 = vmul.f32 %v3037_v12, %v3067_v49  ;;  %v1265_v11 = vadd.f32 %v3151_v21, %v1226_v17  ;;  %v1143_v9 = vadd.f32 %v1111_v27, %v1044_v24  ;;  %v828_v62 = vadd.f32 %v796_v19, %v727_v25  ;;  %v1174_v27 = vld [vmem:[%s3125_s10 + $0x1a] sm:$0xff] }
  0x9b   : > { %v641_v22 = vadd.f32 %v609_v56, %v540_v8  ;;  %v1096_v46 = vmul.f32 %v3015_v30, %v1974_v45  ;;  %v1195_v14 = vmul.f32 %v3044_v18, %v2003_v3  ;;  %v525_v54 = vadd.f32 %v493_v29, %v424_v20  ;;  %v1076_v45 = vld [vmem:[%s3125_s10 + $0x21] sm:$0xff] }
  0x9c   : > { %v696_v40 = vmul.f32 %v3000_v0, %v3174_v44  ;;  %v1297_v63 = vmax.f32 %v1265_v11, 0.0  ;;  %v1242_v33 = vadd.f32 %v1210_v48, %v1143_v9  ;;  %v929_v50 = vadd.f32 %v897_v57, %v828_v62  ;;  %v977_v57 = vld [vmem:[%s3125_s10 + $0x20] sm:$0xff] }
  0x9d   : > { %v743_v49 = vadd.f32 %v3167_v7, %v641_v22  ;;  %v1013_v59 = vmul.f32 %v3008_v16, %v976_v53  ;;  %v626_v2 = vadd.f32 %v594_v26, %v525_v54  ;;  %v797_v34 = vmul.f32 %v3023_v35, %v3185_v13  ;;  %v1175_v26 = vld [vmem:[%s3125_s10 + $0x22] sm:$0xff] }
  0x9e   : > { %v440_v10 = vmul.f32 %v2966_v38, %v3080_v37  ;;  %2112 = vmatmul.mubr.msk.f32.gmra.mxu0 %vm1324_vm1, %v1297_v63  ;;  %v1281_v0 = vadd.f32 %v3151_v21, %v1242_v33  ;;  %v1029_v44 = vadd.f32 %v997_v36, %v929_v50  ;;  %v509_v7 = vmul.f32 %v2973_v15, %v3085_v61 }
  0x9f   : > { %v844_v6 = vadd.f32 %v3180_v23, %v743_v49  ;;  %v1112_v39 = vmul.f32 %v3015_v30, %v1075_v1  ;;  %v728_v13 = vadd.f32 %v696_v40, %v626_v2  ;;  %v898_v19 = vmul.f32 %v2985_v43, %v3196_v47 }
  0xa0   : > { %v610_v38 = vmul.f32 %v3037_v12, %v3106_v41  ;;  %v1313_v37 = vmax.f32 %v1281_v0, 0.0  ;;  %v1128_v51 = vadd.f32 %v1096_v46, %v1029_v44  ;;  %v541_v58 = vadd.f32 %v509_v7, %v440_v10  ;;  %v2004_v41 = vld [vmem:[%s2288_s14 + $0xe2] sm:$0xff] }
  0xa1   : > { %v945_v23 = vadd.f32 %v3205_v60, %v844_v6  ;;  %v813_v15 = vmul.f32 %v3023_v35, %v3212_v31  ;;  %v829_v61 = vadd.f32 %v797_v34, %v728_v13  ;;  %v998_v32 = vmul.f32 %v3008_v16, %v1946_v55 }
  0xa2   : > { %2136 = vmatmul.mubr.msk.f32.gmra.mxu1 %vm1324_vm1, %v1313_v37  ;;  %v1227_v47 = vadd.f32 %v1195_v14, %v1128_v51  ;;  %v1211_v12 = vmul.f32 %v3044_v18, %v1174_v27  ;;  %v642_v4 = vadd.f32 %v610_v38, %v541_v58  ;;  %v1097_v60 = vmul.f32 %v3015_v30, %v1975_v42 }
  0xa3   : > { %v1045_v52 = vadd.f32 %v1013_v59, %v945_v23  ;;  %v930_v48 = vadd.f32 %v898_v19, %v829_v61  ;;  %v914_v35 = vmul.f32 %v2985_v43, %v3223_v28  ;;  %v1196_v25 = vmul.f32 %v3044_v18, %v2004_v41 }
  0xa4   : > { %v1266_v31 = vadd.f32 %v3151_v21, %v1227_v47  ;;  %v744_v17 = vadd.f32 %v3230_v5, %v642_v4  ;;  %v1014_v20 = vmul.f32 %v3008_v16, %v977_v57  ;;  %v1113_v11 = vmul.f32 %v3015_v30, %v1076_v45  ;;  %v3302_v30 = vld [vmem:[%s3420_s5] ss:$0 sm:$0xff] }
  0xa5   : > { %v1144_v56 = vadd.f32 %v1112_v39, %v1045_v52  ;;  %v1030_v24 = vadd.f32 %v998_v32, %v930_v48  ;;  %v1212_v22 = vmul.f32 %v3044_v18, %v1175_v26 }
  0xa6   : > { %v1298_v3 = vmax.f32 %v1266_v31, 0.0  ;;  %v845_v36 = vadd.f32 %v813_v15, %v744_v17 }
  0xa7   : > { %v1243_v8 = vadd.f32 %v1211_v12, %v1144_v56  ;;  %v1129_v29 = vadd.f32 %v1097_v60, %v1030_v24 }
  0xa8   : > { %2114 = vmatprep.mubr.msk.f32.mxu0 %vm1324_vm1, %v1298_v3  ;;  %v946_v28 = vadd.f32 %v914_v35, %v845_v36 }
  0xa9   : > { %v1282_v43 = vadd.f32 %v3151_v21, %v1243_v8  ;;  %v1228_v5 = vadd.f32 %v1196_v25, %v1129_v29 }
  0xaa   : > { %v1046_v62 = vadd.f32 %v1014_v20, %v946_v28 }
  0xab   : > { %v1314_v9 = vmax.f32 %v1282_v43, 0.0  ;;  %v1267_v53 = vadd.f32 %v3151_v21, %v1228_v5 }
  0xac   : > { %v1145_v16 = vadd.f32 %v1113_v11, %v1046_v62 }
  0xad   : > { %2138 = vmatprep.mubr.msk.f32.mxu1 %vm1324_vm1, %v1314_v9  ;;  %v1299_v46 = vmax.f32 %v1267_v53, 0.0 }
  0xae   : > { %v1244_v14 = vadd.f32 %v1212_v22, %v1145_v16 }
  0xaf   : > { %2115 = vmatmul.mubr.msk.f32.gmra.mxu0 %vm1324_vm1, %v1299_v46 }
  0xb0   : > { %v1283_v54 = vadd.f32 %v3151_v21, %v1244_v14 }
  0xb2   : > { %v1315_v40 = vmax.f32 %v1283_v54, 0.0 }
  0xb4   : > { %2139 = vmatmul.mubr.msk.f32.gmra.mxu1 %vm1324_vm1, %v1315_v40 }
  0xed   : > { %v2095_v18 = vpop.f32.mrf.mxu0 }
  0xee   : > { %v1497_v63 = vadd.f32 %v2095_v18, %v3302_v30 }
  0xef   : > { %v1491_v21 = vpop.f32.mrf.mxu0 }
  0xf0   : > { %v1651_v33 = vmax.f32 %v1497_v63, 0.0  ;;  %v2119_v50 = vpop.f32.mrf.mxu1  ;;  %v1492_v49 = vadd.f32 %v3302_v30, %v1491_v21 }
  0xf1   : > { %v1577_v1 = vadd.f32 %v2119_v50, %v3302_v30 }
  0xf2   : > { %1684 = vst.msk [vmem:[%s3309_s18 + $0x8] sm:$0xff] %vm1682_vm2, %v1651_v33  ;;  %v1650_v59 = vmax.f32 %v1492_v49, 0.0  ;;  %v1571_v2 = vpop.f32.mrf.mxu1 }
  0xf3   : > { %v1667_v34 = vmax.f32 %v1577_v1, 0.0  ;;  %v1572_v10 = vadd.f32 %v3302_v30, %v1571_v2 }
  0xf4   : > { %1683 = vst.msk [vmem:[%s3309_s18] sm:$0xff] %vm1682_vm2, %v1650_v59 }
  0xf5   : > { %1700 = vst.msk [vmem:[%s3309_s18 + $0x88] sm:$0xff] %vm1682_vm2, %v1667_v34  ;;  %v1666_v0 = vmax.f32 %v1572_v10, 0.0 }
  0xf7   : > { %1699 = vst.msk [vmem:[%s3309_s18 + $0x80] sm:$0xff] %vm1682_vm2, %v1666_v0 }
  0xff   : > { %v2098_v44 = vpop.f32.mrf.mxu0 }
 0x100   : > { %v1507_v6 = vadd.f32 %v2098_v44, %v3302_v30 }
 0x101   : > { %v1501_v55 = vpop.f32.mrf.mxu0 }
 0x102   : > { %v1653_v7 = vmax.f32 %v1507_v6, 0.0  ;;  %v1502_v39 = vadd.f32 %v3302_v30, %v1501_v55 }
 0x104   : > { %1686 = vst.msk [vmem:[%s3309_s18 + $0x18] sm:$0xff] %vm1682_vm2, %v1653_v7  ;;  %v2122_v27 = vpop.f32.mrf.mxu1  ;;  %v1652_v13 = vmax.f32 %v1502_v39, 0.0 }
 0x105   : > { %v1587_v19 = vadd.f32 %v2122_v27, %v3302_v30 }
 0x106   : > { %1685 = vst.msk [vmem:[%s3309_s18 + $0x10] sm:$0xff] %vm1682_vm2, %v1652_v13  ;;  %v1581_v38 = vpop.f32.mrf.mxu1 }
 0x107   : > { %v1669_v37 = vmax.f32 %v1587_v19, 0.0  ;;  %v1582_v51 = vadd.f32 %v3302_v30, %v1581_v38 }
 0x109   : > { %1702 = vst.msk [vmem:[%s3309_s18 + $0x98] sm:$0xff] %vm1682_vm2, %v1669_v37  ;;  %v1668_v23 = vmax.f32 %v1582_v51, 0.0 }
 0x10b   : > { %1701 = vst.msk [vmem:[%s3309_s18 + $0x90] sm:$0xff] %vm1682_vm2, %v1668_v23 }
 0x111   : > { %v2101_v42 = vpop.f32.mrf.mxu0 }
 0x112   : > { %v1517_v58 = vadd.f32 %v2101_v42, %v3302_v30 }
 0x113   : > { %v1511_v15 = vpop.f32.mrf.mxu0 }
 0x114   : > { %v1655_v61 = vmax.f32 %v1517_v58, 0.0  ;;  %v1512_v32 = vadd.f32 %v3302_v30, %v1511_v15 }
 0x116   : > { %v2125_v47 = vpop.f32.mrf.mxu1  ;;  %1688 = vst.msk [vmem:[%s3309_s18 + $0x28] sm:$0xff] %vm1682_vm2, %v1655_v61  ;;  %v1654_v12 = vmax.f32 %v1512_v32, 0.0 }
 0x117   : > { %v1597_v52 = vadd.f32 %v2125_v47, %v3302_v30 }
 0x118   : > { %v1591_v41 = vpop.f32.mrf.mxu1  ;;  %1687 = vst.msk [vmem:[%s3309_s18 + $0x20] sm:$0xff] %vm1682_vm2, %v1654_v12 }
 0x119   : > { %v1671_v4 = vmax.f32 %v1597_v52, 0.0  ;;  %v1592_v48 = vadd.f32 %v3302_v30, %v1591_v41 }
 0x11b   : > { %1704 = vst.msk [vmem:[%s3309_s18 + $0xa8] sm:$0xff] %vm1682_vm2, %v1671_v4  ;;  %v1670_v60 = vmax.f32 %v1592_v48, 0.0 }
 0x11d   : > { %1703 = vst.msk [vmem:[%s3309_s18 + $0xa0] sm:$0xff] %vm1682_vm2, %v1670_v60 }
 0x124   : > { %v2104_v57 = vpop.f32.mrf.mxu0 }
 0x125   : > { %v1527_v35 = vadd.f32 %v2104_v57, %v3302_v30 }
 0x126   : > { %v1521_v31 = vpop.f32.mrf.mxu0 }
 0x127   : > { %v1657_v56 = vmax.f32 %v1527_v35, 0.0  ;;  %v1522_v17 = vadd.f32 %v3302_v30, %v1521_v31 }
 0x129   : > { %1690 = vst.msk [vmem:[%s3309_s18 + $0x38] sm:$0xff] %vm1682_vm2, %v1657_v56  ;;  %v2128_v24 = vpop.f32.mrf.mxu1  ;;  %v1656_v25 = vmax.f32 %v1522_v17, 0.0 }
 0x12a   : > { %v1607_v45 = vadd.f32 %v2128_v24, %v3302_v30 }
 0x12b   : > { %1689 = vst.msk [vmem:[%s3309_s18 + $0x30] sm:$0xff] %vm1682_vm2, %v1656_v25  ;;  %v1601_v3 = vpop.f32.mrf.mxu1 }
 0x12c   : > { %v1673_v8 = vmax.f32 %v1607_v45, 0.0  ;;  %v1602_v36 = vadd.f32 %v3302_v30, %v1601_v3 }
 0x12e   : > { %1706 = vst.msk [vmem:[%s3309_s18 + $0xb8] sm:$0xff] %vm1682_vm2, %v1673_v8  ;;  %v1672_v20 = vmax.f32 %v1602_v36, 0.0 }
 0x130   : > { %1705 = vst.msk [vmem:[%s3309_s18 + $0xb0] sm:$0xff] %vm1682_vm2, %v1672_v20 }
 0x137   : > { %v2107_v29 = vpop.f32.mrf.mxu0 }
 0x138   : > { %v1537_v26 = vadd.f32 %v2107_v29, %v3302_v30 }
 0x139   : > { %v1531_v43 = vpop.f32.mrf.mxu0 }
 0x13a   : > { %v1659_v28 = vmax.f32 %v1537_v26, 0.0  ;;  %v1532_v11 = vadd.f32 %v3302_v30, %v1531_v43 }
 0x13c   : > { %1692 = vst.msk [vmem:[%s3309_s18 + $0x48] sm:$0xff] %vm1682_vm2, %v1659_v28  ;;  %v2131_v5 = vpop.f32.mrf.mxu1  ;;  %v1658_v9 = vmax.f32 %v1532_v11, 0.0 }
 0x13d   : > { %v1617_v62 = vadd.f32 %v2131_v5, %v3302_v30 }
 0x13e   : > { %1691 = vst.msk [vmem:[%s3309_s18 + $0x40] sm:$0xff] %vm1682_vm2, %v1658_v9  ;;  %v1611_v22 = vpop.f32.mrf.mxu1 }
 0x13f   : > { %v1675_v53 = vmax.f32 %v1617_v62, 0.0  ;;  %v1612_v16 = vadd.f32 %v3302_v30, %v1611_v22 }
 0x141   : > { %1708 = vst.msk [vmem:[%s3309_s18 + $0xc8] sm:$0xff] %vm1682_vm2, %v1675_v53  ;;  %v1674_v46 = vmax.f32 %v1612_v16, 0.0 }
 0x143   : > { %1707 = vst.msk [vmem:[%s3309_s18 + $0xc0] sm:$0xff] %vm1682_vm2, %v1674_v46 }
 0x14a   : > { %v2110_v14 = vpop.f32.mrf.mxu0 }
 0x14b   : > { %v1547_v54 = vadd.f32 %v2110_v14, %v3302_v30 }
 0x14c   : > { %v1541_v40 = vpop.f32.mrf.mxu0 }
 0x14d   : > { %v1661_v18 = vmax.f32 %v1547_v54, 0.0  ;;  %v1542_v63 = vadd.f32 %v3302_v30, %v1541_v40 }
 0x14f   : > { %1694 = vst.msk [vmem:[%s3309_s18 + $0x58] sm:$0xff] %vm1682_vm2, %v1661_v18  ;;  %v2134_v21 = vpop.f32.mrf.mxu1  ;;  %v1660_v33 = vmax.f32 %v1542_v63, 0.0 }
 0x150   : > { %v1627_v50 = vadd.f32 %v2134_v21, %v3302_v30 }
 0x151   : > { %1693 = vst.msk [vmem:[%s3309_s18 + $0x50] sm:$0xff] %vm1682_vm2, %v1660_v33  ;;  %v1621_v49 = vpop.f32.mrf.mxu1 }
 0x152   : > { %v1677_v1 = vmax.f32 %v1627_v50, 0.0  ;;  %v1622_v59 = vadd.f32 %v3302_v30, %v1621_v49 }
 0x154   : > { %1710 = vst.msk [vmem:[%s3309_s18 + $0xd8] sm:$0xff] %vm1682_vm2, %v1677_v1  ;;  %v1676_v2 = vmax.f32 %v1622_v59, 0.0 }
 0x156   : > { %1709 = vst.msk [vmem:[%s3309_s18 + $0xd0] sm:$0xff] %vm1682_vm2, %v1676_v2 }
 0x15e   : > { %v2113_v34 = vpop.f32.mrf.mxu0 }
 0x15f   : > { %v1557_v10 = vadd.f32 %v2113_v34, %v3302_v30 }
 0x160   : > { %v1551_v0 = vpop.f32.mrf.mxu0 }
 0x161   : > { %v1663_v44 = vmax.f32 %v1557_v10, 0.0  ;;  %v1552_v6 = vadd.f32 %v3302_v30, %v1551_v0 }
 0x162   : > { %v2137_v55 = vpop.f32.mrf.mxu1 }
 0x163   : > { %1696 = vst.msk [vmem:[%s3309_s18 + $0x68] sm:$0xff] %vm1682_vm2, %v1663_v44  ;;  %v1637_v7 = vadd.f32 %v2137_v55, %v3302_v30  ;;  %v1662_v39 = vmax.f32 %v1552_v6, 0.0 }
 0x164   : > { %v1631_v27 = vpop.f32.mrf.mxu1 }
 0x165   : > { %v1679_v13 = vmax.f32 %v1637_v7, 0.0  ;;  %1695 = vst.msk [vmem:[%s3309_s18 + $0x60] sm:$0xff] %vm1682_vm2, %v1662_v39  ;;  %v1632_v19 = vadd.f32 %v3302_v30, %v1631_v27 }
 0x167   : > { %1712 = vst.msk [vmem:[%s3309_s18 + $0xe8] sm:$0xff] %vm1682_vm2, %v1679_v13  ;;  %v1678_v38 = vmax.f32 %v1632_v19, 0.0 }
 0x169   : > { %1711 = vst.msk [vmem:[%s3309_s18 + $0xe0] sm:$0xff] %vm1682_vm2, %v1678_v38 }
 0x16f   : > { %v2116_v37 = vpop.f32.mrf.mxu0 }
 0x170   : > { %v1567_v51 = vadd.f32 %v2116_v37, %v3302_v30 }
 0x171   : > { %v1561_v23 = vpop.f32.mrf.mxu0 }
 0x172   : > { %v1665_v42 = vmax.f32 %v1567_v51, 0.0  ;;  %v1562_v58 = vadd.f32 %v3302_v30, %v1561_v23 }
 0x174   : > { %1698 = vst.msk [vmem:[%s3309_s18 + $0x78] sm:$0xff] %vm1682_vm2, %v1665_v42  ;;  %v2140_v15 = vpop.f32.mrf.mxu1  ;;  %v1664_v61 = vmax.f32 %v1562_v58, 0.0 }
 0x175   : > { %v1647_v32 = vadd.f32 %v2140_v15, %v3302_v30 }
 0x176   : > { %1697 = vst.msk [vmem:[%s3309_s18 + $0x70] sm:$0xff] %vm1682_vm2, %v1664_v61  ;;  %v1641_v47 = vpop.f32.mrf.mxu1 }
 0x177   : > { %v1681_v52 = vmax.f32 %v1647_v32, 0.0  ;;  %v1642_v12 = vadd.f32 %v3302_v30, %v1641_v47 }
 0x179   : > { %1714 = vst.msk [vmem:[%s3309_s18 + $0xf8] sm:$0xff] %vm1682_vm2, %v1681_v52  ;;  %v1680_v41 = vmax.f32 %v1642_v12, 0.0 }
 0x17b   : > { %1713 = vst.msk [vmem:[%s3309_s18 + $0xf0] sm:$0xff] %vm1682_vm2, %v1680_v41 }
 0x17c PF: > { %s16_s23 = sadd.s32 1, %s2202_s23   ;;  %s3422_s21 = smov %s2198_s22 }
 0x17d   : > { %p13_p5 = scmp.ge.s32.totalorder %s16_s23, 4   ;;  %s3423_s22 = smov %s3425_s24 }
 0x17f   :  { %15 = sbr.rel (!%p13_p5) target bundleno = 2 (0x2), region = 79 }

</bundles_post_ra>
